<compile_context>
chip_gen: v7x
topology: tpu7x:2x2x1
jax: 0.10.0
libtpu: 0.0.40
codegen_flags: <defaults>
</compile_context>

<pallas_src>
import jax
import jax.numpy as jnp
from jax.experimental import pallas as pl
from jax.experimental.pallas import tpu as pltpu  # noqa: F401  (TPU backend)

# ---- model config (matches the PyTorch module's implied globals) ----
EMB = 32            # emb_size
HIDDEN = 64         # hidden_size
HEADS = 4           # MultiHeadAttention.head_num
HEAD_DIM = EMB // HEADS
SEQ = 8
BATCH = 2
LN_EPS = 1e-5                               # torch nn.LayerNorm default
SCALE = float(int(HEAD_DIM ** 0.5))         # torch: int(k.shape[-1] ** 0.5) == 2 for D=8
INV_SCALE = 1.0 / SCALE
MASK_FILL = 1e-9                            # torch: masked_fill_(mask, 1e-09)


def _layernorm(y, gamma, beta):
    mean = jnp.mean(y, axis=-1, keepdims=True)
    var = jnp.mean((y - mean) ** 2, axis=-1, keepdims=True)
    return (y - mean) * jax.lax.rsqrt(var + LN_EPS) * gamma + beta


def _split_heads(t):
    # (S, E) -> (H, S, D): static lane slices stacked along a new major axis.
    return jnp.stack([t[:, h * HEAD_DIM:(h + 1) * HEAD_DIM] for h in range(HEADS)])


def _attention(xb, full_mask, wqkv, bqkv, gamma, beta):
    # Fused QKV projection: one (S,E)@(E,3E) MXU matmul instead of three.
    qkv = jnp.dot(xb, wqkv, preferred_element_type=jnp.float32) + bqkv     # (S, 3E)
    q = qkv[:, :EMB] * INV_SCALE            # fold 1/SCALE into q once
    k = qkv[:, EMB:2 * EMB]
    v = qkv[:, 2 * EMB:]

    qh, kh, vh = _split_heads(q), _split_heads(k), _split_heads(v)         # (H, S, D)

    s = jnp.einsum('hqd,hkd->hqk', qh, kh,
                   preferred_element_type=jnp.float32)                     # (H, S, S)
    s = jnp.where(full_mask[None], MASK_FILL, s)     # masked_fill_ with 1e-9 (not -inf)
    s = s - jnp.max(s, axis=-1, keepdims=True)
    p = jnp.exp(s)
    denom = jnp.sum(p, axis=-1, keepdims=True)
    r = pl.reciprocal(denom, approx=True)            # EUP slot (otherwise idle)
    r = r * (2.0 - denom * r)                        # one Newton step -> f32-accurate
    p = p * r                                        # softmax(dim=-1)

    o = jnp.einsum('hqk,hkd->hqd', p, vh,
                   preferred_element_type=jnp.float32)                     # (H, S, D)
    attn = jnp.concatenate([o[h] for h in range(HEADS)], axis=-1)          # (S, E)
    return _layernorm(attn + xb, gamma, beta)        # residual + LayerNorm


def decoder_kernel(x_ref, mask_ref,
                   wqkv1_ref, bqkv1_ref, g1_ref, be1_ref,
                   wqkv2_ref, bqkv2_ref, g2_ref, be2_ref,
                   wf1_ref, bf1_ref, wf2_ref, bf2_ref, g3_ref, be3_ref,
                   out_ref):
    S = SEQ
    row = jax.lax.broadcasted_iota(jnp.int32, (S, S), 0)
    col = jax.lax.broadcasted_iota(jnp.int32, (S, S), 1)
    causal = col > row                                       # torch.triu(ones, 1)

    for b in range(BATCH):                                   # static unroll (B=2)
        xb = x_ref[b]                                        # (S, E)
        pad = mask_ref[b] > 0                                # (S, 1): padded query rows
        full_mask = jnp.logical_or(pad, causal)              # pad | look_ahead, (S, S)

        xb = _attention(xb, full_mask, wqkv1_ref[...], bqkv1_ref[...],
                        g1_ref[...], be1_ref[...])
        xb = _attention(xb, full_mask, wqkv2_ref[...], bqkv2_ref[...],
                        g2_ref[...], be2_ref[...])

        # FeedForward: Linear -> ReLU -> Linear -> residual -> LayerNorm
        h = jnp.dot(xb, wf1_ref[...], preferred_element_type=jnp.float32) + bf1_ref[...]
        h = jnp.maximum(h, 0.0)
        y = jnp.dot(h, wf2_ref[...], preferred_element_type=jnp.float32) + bf2_ref[...]
        out_ref[b] = _layernorm(y + xb, g3_ref[...], be3_ref[...]).astype(out_ref.dtype)


def _pack_attn(p):
    # Pack Wq|Wk|Wv -> (E, 3E), bq|bk|bv -> (1, 3E).  (Could be done once at init.)
    wq, bq, wk, bk, wv, bv, gamma, beta = p
    return (jnp.concatenate([wq, wk, wv], axis=1),
            jnp.concatenate([bq, bk, bv], axis=1),
            gamma, beta)


def decoder_layer(x, attention_mask, params):
    B, S, E = x.shape
    wqkv1, bqkv1, g1, be1 = _pack_attn(params["attn1"])
    wqkv2, bqkv2, g2, be2 = _pack_attn(params["attn2"])
    w1, b1, w2, b2, g3, be3 = params["ffn"]
    # No grid, no per-operand BlockSpecs: every operand is a single whole-array VMEM
    # block, the kernel body runs exactly once (everything fits trivially in VMEM).
    return pl.pallas_call(
        decoder_kernel,
        out_shape=jax.ShapeDtypeStruct((B, S, E), jnp.float32),
    )(x, attention_mask,
      wqkv1, bqkv1, g1, be1,
      wqkv2, bqkv2, g2, be2,
      w1, b1, w2, b2, g3, be3)


# --------------------------- pure-JAX reference ---------------------------
def _ref_attention(x, mask, params):
    wq, bq, wk, bk, wv, bv, gamma, beta = params
    B, S, E = x.shape
    q = (x @ wq + bq).reshape(B, S, HEADS, HEAD_DIM).transpose(0, 2, 1, 3)
    k = (x @ wk + bk).reshape(B, S, HEADS, HEAD_DIM).transpose(0, 2, 1, 3)
    v = (x @ wv + bv).reshape(B, S, HEADS, HEAD_DIM).transpose(0, 2, 1, 3)
    w = jnp.einsum("bhqd,bhkd->bhqk", q, k) / SCALE
    pad = (mask[:, None, :, :] > 0)                                   # (B,1,S,1)
    causal = jnp.triu(jnp.ones((S, S), bool), 1)[None, None]
    w = jnp.where(jnp.logical_or(pad, causal), MASK_FILL, w)
    w = jax.nn.softmax(w, axis=-1)
    o = jnp.einsum("bhqk,bhkd->bhqd", w, v).transpose(0, 2, 1, 3).reshape(B, S, E)
    y = o + x
    mean = y.mean(-1, keepdims=True)
    var = ((y - mean) ** 2).mean(-1, keepdims=True)
    return (y - mean) / jnp.sqrt(var + LN_EPS) * gamma + beta


def _ref_ffn(x, params):
    w1, b1, w2, b2, gamma, beta = params
    y = jnp.maximum(x @ w1 + b1, 0.0) @ w2 + b2 + x
    mean = y.mean(-1, keepdims=True)
    var = ((y - mean) ** 2).mean(-1, keepdims=True)
    return (y - mean) / jnp.sqrt(var + LN_EPS) * gamma + beta


def _ref_decoder(x, mask, params):
    x = _ref_attention(x, mask, params["attn1"])
    x = _ref_attention(x, mask, params["attn2"])
    return _ref_ffn(x, params["ffn"])


# ------------------------------ param init ------------------------------
def init_params(key):
    def lin(key, fan_in, fan_out):
        k1, k2 = jax.random.split(key)
        lim = 1.0 / (fan_in ** 0.5)
        w = jax.random.uniform(k1, (fan_in, fan_out), jnp.float32, -lim, lim)
        b = jax.random.uniform(k2, (1, fan_out), jnp.float32, -lim, lim)
        return w, b

    keys = jax.random.split(key, 8)

    def attn_params(k):
        ks = jax.random.split(k, 3)
        wq, bq = lin(ks[0], EMB, EMB)
        wk, bk = lin(ks[1], EMB, EMB)
        wv, bv = lin(ks[2], EMB, EMB)
        gamma = jnp.ones((1, EMB), jnp.float32)
        beta = jnp.zeros((1, EMB), jnp.float32)
        return (wq, bq, wk, bk, wv, bv, gamma, beta)

    w1, b1 = lin(keys[2], EMB, HIDDEN)
    w2, b2 = lin(keys[3], HIDDEN, EMB)
    ffn = (w1, b1, w2, b2, jnp.ones((1, EMB), jnp.float32),
           jnp.zeros((1, EMB), jnp.float32))
    return {"attn1": attn_params(keys[0]), "attn2": attn_params(keys[1]), "ffn": ffn}


if __name__ == "__main__":
    key = jax.random.PRNGKey(0)
    kx, kp = jax.random.split(key)
    x = jax.random.normal(kx, (BATCH, SEQ, EMB), jnp.float32)
    # padding mask: 1 = padded position; last 3 tokens of batch element 1 are pads
    pad_mask = jnp.zeros((BATCH, SEQ, 1), jnp.int32)
    pad_mask = pad_mask.at[1, SEQ - 3:, 0].set(1)
    params = init_params(kp)

    decoder_fn = jax.jit(decoder_layer)        # fuses the QKV weight packing with the call
    out = jax.block_until_ready(decoder_fn(x, pad_mask, params))

    ref = _ref_decoder(x, pad_mask, params)
    assert out.shape == (BATCH, SEQ, EMB)
    assert jnp.allclose(out, ref, rtol=1e-3, atol=1e-3), "mismatch vs. JAX reference"
    print("KERNEL_OK")
</pallas_src>

<mosaic_0001>
module attributes {stable_mosaic.version = 11 : i64} {
  func.func @decoder_kernel(%arg0: memref<2x8x32xf32, #tpu.memory_space<vmem>>, %arg1: memref<2x8x1xi32, #tpu.memory_space<vmem>>, %arg2: memref<32x96xf32, #tpu.memory_space<vmem>>, %arg3: memref<1x96xf32, #tpu.memory_space<vmem>>, %arg4: memref<1x32xf32, #tpu.memory_space<vmem>>, %arg5: memref<1x32xf32, #tpu.memory_space<vmem>>, %arg6: memref<32x96xf32, #tpu.memory_space<vmem>>, %arg7: memref<1x96xf32, #tpu.memory_space<vmem>>, %arg8: memref<1x32xf32, #tpu.memory_space<vmem>>, %arg9: memref<1x32xf32, #tpu.memory_space<vmem>>, %arg10: memref<32x64xf32, #tpu.memory_space<vmem>>, %arg11: memref<1x64xf32, #tpu.memory_space<vmem>>, %arg12: memref<64x32xf32, #tpu.memory_space<vmem>>, %arg13: memref<1x32xf32, #tpu.memory_space<vmem>>, %arg14: memref<1x32xf32, #tpu.memory_space<vmem>>, %arg15: memref<1x32xf32, #tpu.memory_space<vmem>>, %arg16: memref<2x8x32xf32, #tpu.memory_space<vmem>>) attributes {dimension_semantics = [], scalar_prefetch = 0 : i64, scratch_operands = 0 : i64, tpu.core_type = #tpu.core_type<tc>} {
    %0 = tpu.iota {dimensions = array<i32: 0>} : vector<8x8xi32>
    %1 = tpu.iota {dimensions = array<i32: 1>} : vector<8x8xi32>
    %2 = arith.cmpi sgt, %1, %0 : vector<8x8xi32>
    %c0 = arith.constant 0 : index
    %c0_0 = arith.constant 0 : index
    %c0_1 = arith.constant 0 : index
    %3 = vector.load %arg0[%c0, %c0_0, %c0_1] : memref<2x8x32xf32, #tpu.memory_space<vmem>>, vector<1x8x32xf32>
    %4 = vector.shape_cast %3 : vector<1x8x32xf32> to vector<8x32xf32>
    %c0_2 = arith.constant 0 : index
    %c0_3 = arith.constant 0 : index
    %c0_4 = arith.constant 0 : index
    %5 = vector.load %arg1[%c0_2, %c0_3, %c0_4] : memref<2x8x1xi32, #tpu.memory_space<vmem>>, vector<1x8x1xi32>
    %6 = vector.shape_cast %5 : vector<1x8x1xi32> to vector<8x1xi32>
    %c0_i32 = arith.constant 0 : i32
    %7 = vector.broadcast %c0_i32 : i32 to vector<8x1xi32>
    %8 = arith.cmpi sgt, %6, %7 : vector<8x1xi32>
    %9 = vector.broadcast %8 : vector<8x1xi1> to vector<8x8xi1>
    %10 = arith.ori %9, %2 : vector<8x8xi1>
    %c0_5 = arith.constant 0 : index
    %c0_6 = arith.constant 0 : index
    %11 = vector.load %arg2[%c0_5, %c0_6] : memref<32x96xf32, #tpu.memory_space<vmem>>, vector<32x96xf32>
    %c0_7 = arith.constant 0 : index
    %c0_8 = arith.constant 0 : index
    %12 = vector.load %arg3[%c0_7, %c0_8] : memref<1x96xf32, #tpu.memory_space<vmem>>, vector<1x96xf32>
    %c0_9 = arith.constant 0 : index
    %c0_10 = arith.constant 0 : index
    %13 = vector.load %arg4[%c0_9, %c0_10] : memref<1x32xf32, #tpu.memory_space<vmem>>, vector<1x32xf32>
    %c0_11 = arith.constant 0 : index
    %c0_12 = arith.constant 0 : index
    %14 = vector.load %arg5[%c0_11, %c0_12] : memref<1x32xf32, #tpu.memory_space<vmem>>, vector<1x32xf32>
    %cst = arith.constant dense<0.000000e+00> : vector<8x96xf32>
    %15 = tpu.matmul %4, %11, %cst {dimension_numbers = #tpu.dot_dimension_numbers<[1], [0], [0], [1], [0, 0, 1, 1], [], []>} : vector<8x32xf32>, vector<32x96xf32>, vector<8x96xf32> -> vector<8x96xf32>
    %16 = vector.broadcast %12 : vector<1x96xf32> to vector<8x96xf32>
    %17 = arith.addf %15, %16 : vector<8x96xf32>
    %18 = vector.extract_strided_slice %17 {offsets = [0, 0], sizes = [8, 32], strides = [1, 1]} : vector<8x96xf32> to vector<8x32xf32>
    %cst_13 = arith.constant 5.000000e-01 : f32
    %19 = vector.broadcast %cst_13 : f32 to vector<8x32xf32>
    %20 = arith.mulf %18, %19 : vector<8x32xf32>
    %21 = vector.extract_strided_slice %17 {offsets = [0, 32], sizes = [8, 32], strides = [1, 1]} : vector<8x96xf32> to vector<8x32xf32>
    %22 = vector.extract_strided_slice %17 {offsets = [0, 64], sizes = [8, 32], strides = [1, 1]} : vector<8x96xf32> to vector<8x32xf32>
    %23 = vector.extract_strided_slice %20 {offsets = [0, 0], sizes = [8, 8], strides = [1, 1]} : vector<8x32xf32> to vector<8x8xf32>
    %24 = vector.extract_strided_slice %20 {offsets = [0, 8], sizes = [8, 8], strides = [1, 1]} : vector<8x32xf32> to vector<8x8xf32>
    %25 = vector.extract_strided_slice %20 {offsets = [0, 16], sizes = [8, 8], strides = [1, 1]} : vector<8x32xf32> to vector<8x8xf32>
    %26 = vector.extract_strided_slice %20 {offsets = [0, 24], sizes = [8, 8], strides = [1, 1]} : vector<8x32xf32> to vector<8x8xf32>
    %27 = vector.shape_cast %23 : vector<8x8xf32> to vector<1x8x8xf32>
    %28 = vector.shape_cast %24 : vector<8x8xf32> to vector<1x8x8xf32>
    %29 = vector.shape_cast %25 : vector<8x8xf32> to vector<1x8x8xf32>
    %30 = vector.shape_cast %26 : vector<8x8xf32> to vector<1x8x8xf32>
    %31 = tpu.concatenate %27, %28, %29, %30 in 0 : vector<1x8x8xf32>, vector<1x8x8xf32>, vector<1x8x8xf32>, vector<1x8x8xf32> -> vector<4x8x8xf32>
    %32 = vector.extract_strided_slice %21 {offsets = [0, 0], sizes = [8, 8], strides = [1, 1]} : vector<8x32xf32> to vector<8x8xf32>
    %33 = vector.extract_strided_slice %21 {offsets = [0, 8], sizes = [8, 8], strides = [1, 1]} : vector<8x32xf32> to vector<8x8xf32>
    %34 = vector.extract_strided_slice %21 {offsets = [0, 16], sizes = [8, 8], strides = [1, 1]} : vector<8x32xf32> to vector<8x8xf32>
    %35 = vector.extract_strided_slice %21 {offsets = [0, 24], sizes = [8, 8], strides = [1, 1]} : vector<8x32xf32> to vector<8x8xf32>
    %36 = vector.shape_cast %32 : vector<8x8xf32> to vector<1x8x8xf32>
    %37 = vector.shape_cast %33 : vector<8x8xf32> to vector<1x8x8xf32>
    %38 = vector.shape_cast %34 : vector<8x8xf32> to vector<1x8x8xf32>
    %39 = vector.shape_cast %35 : vector<8x8xf32> to vector<1x8x8xf32>
    %40 = tpu.concatenate %36, %37, %38, %39 in 0 : vector<1x8x8xf32>, vector<1x8x8xf32>, vector<1x8x8xf32>, vector<1x8x8xf32> -> vector<4x8x8xf32>
    %41 = vector.extract_strided_slice %22 {offsets = [0, 0], sizes = [8, 8], strides = [1, 1]} : vector<8x32xf32> to vector<8x8xf32>
    %42 = vector.extract_strided_slice %22 {offsets = [0, 8], sizes = [8, 8], strides = [1, 1]} : vector<8x32xf32> to vector<8x8xf32>
    %43 = vector.extract_strided_slice %22 {offsets = [0, 16], sizes = [8, 8], strides = [1, 1]} : vector<8x32xf32> to vector<8x8xf32>
    %44 = vector.extract_strided_slice %22 {offsets = [0, 24], sizes = [8, 8], strides = [1, 1]} : vector<8x32xf32> to vector<8x8xf32>
    %45 = vector.shape_cast %41 : vector<8x8xf32> to vector<1x8x8xf32>
    %46 = vector.shape_cast %42 : vector<8x8xf32> to vector<1x8x8xf32>
    %47 = vector.shape_cast %43 : vector<8x8xf32> to vector<1x8x8xf32>
    %48 = vector.shape_cast %44 : vector<8x8xf32> to vector<1x8x8xf32>
    %49 = tpu.concatenate %45, %46, %47, %48 in 0 : vector<1x8x8xf32>, vector<1x8x8xf32>, vector<1x8x8xf32>, vector<1x8x8xf32> -> vector<4x8x8xf32>
    "tpu.trace_start"() <{level = 10 : i32, message = "hqd,hkd->hqk"}> : () -> ()
    %cst_14 = arith.constant dense<0.000000e+00> : vector<4x8x8xf32>
    %50 = tpu.matmul %31, %40, %cst_14 {dimension_numbers = #tpu.dot_dimension_numbers<[2], [2], [1], [1], [0, 0, 0, 1, 1, 1], [0], [0]>} : vector<4x8x8xf32>, vector<4x8x8xf32>, vector<4x8x8xf32> -> vector<4x8x8xf32>
    "tpu.trace_stop"() : () -> ()
    %51 = vector.shape_cast %10 : vector<8x8xi1> to vector<1x8x8xi1>
    %cst_15 = arith.constant 9.99999971E-10 : f32
    %52 = vector.shape_cast %51 : vector<1x8x8xi1> to vector<1x8x8xi1>
    %53 = vector.broadcast %52 : vector<1x8x8xi1> to vector<4x8x8xi1>
    %54 = vector.broadcast %cst_15 : f32 to vector<4x8x8xf32>
    %55 = arith.select %53, %54, %50 : vector<4x8x8xi1>, vector<4x8x8xf32>
    %cst_16 = arith.constant dense<0xFF800000> : vector<4x8xf32>
    %56 = vector.multi_reduction <maximumf>, %55, %cst_16 [2] : vector<4x8x8xf32> to vector<4x8xf32>
    %57 = vector.shape_cast %56 : vector<4x8xf32> to vector<4x8x1xf32>
    %58 = vector.broadcast %57 : vector<4x8x1xf32> to vector<4x8x8xf32>
    %59 = arith.subf %55, %58 : vector<4x8x8xf32>
    %60 = math.exp %59 : vector<4x8x8xf32>
    %cst_17 = arith.constant dense<0.000000e+00> : vector<4x8xf32>
    %61 = vector.multi_reduction <add>, %60, %cst_17 [2] : vector<4x8x8xf32> to vector<4x8xf32>
    %62 = vector.shape_cast %61 : vector<4x8xf32> to vector<4x8x1xf32>
    %63 = tpu.reciprocal %62 {approx = true} : vector<4x8x1xf32> -> vector<4x8x1xf32>
    %64 = arith.mulf %62, %63 : vector<4x8x1xf32>
    %cst_18 = arith.constant 2.000000e+00 : f32
    %65 = vector.broadcast %cst_18 : f32 to vector<4x8x1xf32>
    %66 = arith.subf %65, %64 : vector<4x8x1xf32>
    %67 = arith.mulf %63, %66 : vector<4x8x1xf32>
    %68 = vector.broadcast %67 : vector<4x8x1xf32> to vector<4x8x8xf32>
    %69 = arith.mulf %60, %68 : vector<4x8x8xf32>
    "tpu.trace_start"() <{level = 10 : i32, message = "hqk,hkd->hqd"}> : () -> ()
    %cst_19 = arith.constant dense<0.000000e+00> : vector<4x8x8xf32>
    %70 = tpu.matmul %69, %49, %cst_19 {dimension_numbers = #tpu.dot_dimension_numbers<[2], [1], [1], [2], [0, 0, 0, 1, 1, 2], [0], [0]>} : vector<4x8x8xf32>, vector<4x8x8xf32>, vector<4x8x8xf32> -> vector<4x8x8xf32>
    "tpu.trace_stop"() : () -> ()
    %71 = vector.extract_strided_slice %70 {offsets = [0, 0, 0], sizes = [1, 8, 8], strides = [1, 1, 1]} : vector<4x8x8xf32> to vector<1x8x8xf32>
    %72 = vector.shape_cast %71 : vector<1x8x8xf32> to vector<8x8xf32>
    %73 = vector.extract_strided_slice %70 {offsets = [1, 0, 0], sizes = [1, 8, 8], strides = [1, 1, 1]} : vector<4x8x8xf32> to vector<1x8x8xf32>
    %74 = vector.shape_cast %73 : vector<1x8x8xf32> to vector<8x8xf32>
    %75 = vector.extract_strided_slice %70 {offsets = [2, 0, 0], sizes = [1, 8, 8], strides = [1, 1, 1]} : vector<4x8x8xf32> to vector<1x8x8xf32>
    %76 = vector.shape_cast %75 : vector<1x8x8xf32> to vector<8x8xf32>
    %77 = vector.extract_strided_slice %70 {offsets = [3, 0, 0], sizes = [1, 8, 8], strides = [1, 1, 1]} : vector<4x8x8xf32> to vector<1x8x8xf32>
    %78 = vector.shape_cast %77 : vector<1x8x8xf32> to vector<8x8xf32>
    %79 = tpu.concatenate %72, %74, %76, %78 in 1 : vector<8x8xf32>, vector<8x8xf32>, vector<8x8xf32>, vector<8x8xf32> -> vector<8x32xf32>
    %80 = arith.addf %79, %4 : vector<8x32xf32>
    %cst_20 = arith.constant dense<0.000000e+00> : vector<8xf32>
    %81 = vector.multi_reduction <add>, %80, %cst_20 [1] : vector<8x32xf32> to vector<8xf32>
    %82 = vector.shape_cast %81 : vector<8xf32> to vector<8x1xf32>
    %cst_21 = arith.constant 3.200000e+01 : f32
    %83 = vector.broadcast %cst_21 : f32 to vector<8x1xf32>
    %84 = arith.divf %82, %83 : vector<8x1xf32>
    %85 = vector.broadcast %84 : vector<8x1xf32> to vector<8x32xf32>
    %86 = arith.subf %80, %85 : vector<8x32xf32>
    %87 = arith.mulf %86, %86 : vector<8x32xf32>
    %cst_22 = arith.constant dense<0.000000e+00> : vector<8xf32>
    %88 = vector.multi_reduction <add>, %87, %cst_22 [1] : vector<8x32xf32> to vector<8xf32>
    %89 = vector.shape_cast %88 : vector<8xf32> to vector<8x1xf32>
    %cst_23 = arith.constant 3.200000e+01 : f32
    %90 = vector.broadcast %cst_23 : f32 to vector<8x1xf32>
    %91 = arith.divf %89, %90 : vector<8x1xf32>
    %92 = vector.broadcast %84 : vector<8x1xf32> to vector<8x32xf32>
    %93 = arith.subf %80, %92 : vector<8x32xf32>
    %cst_24 = arith.constant 9.99999974E-6 : f32
    %94 = vector.broadcast %cst_24 : f32 to vector<8x1xf32>
    %95 = arith.addf %91, %94 : vector<8x1xf32>
    %96 = math.rsqrt %95 : vector<8x1xf32>
    %97 = vector.broadcast %96 : vector<8x1xf32> to vector<8x32xf32>
    %98 = arith.mulf %93, %97 : vector<8x32xf32>
    %99 = vector.broadcast %13 : vector<1x32xf32> to vector<8x32xf32>
    %100 = arith.mulf %98, %99 : vector<8x32xf32>
    %101 = vector.broadcast %14 : vector<1x32xf32> to vector<8x32xf32>
    %102 = arith.addf %100, %101 : vector<8x32xf32>
    %c0_25 = arith.constant 0 : index
    %c0_26 = arith.constant 0 : index
    %103 = vector.load %arg6[%c0_25, %c0_26] : memref<32x96xf32, #tpu.memory_space<vmem>>, vector<32x96xf32>
    %c0_27 = arith.constant 0 : index
    %c0_28 = arith.constant 0 : index
    %104 = vector.load %arg7[%c0_27, %c0_28] : memref<1x96xf32, #tpu.memory_space<vmem>>, vector<1x96xf32>
    %c0_29 = arith.constant 0 : index
    %c0_30 = arith.constant 0 : index
    %105 = vector.load %arg8[%c0_29, %c0_30] : memref<1x32xf32, #tpu.memory_space<vmem>>, vector<1x32xf32>
    %c0_31 = arith.constant 0 : index
    %c0_32 = arith.constant 0 : index
    %106 = vector.load %arg9[%c0_31, %c0_32] : memref<1x32xf32, #tpu.memory_space<vmem>>, vector<1x32xf32>
    %cst_33 = arith.constant dense<0.000000e+00> : vector<8x96xf32>
    %107 = tpu.matmul %102, %103, %cst_33 {dimension_numbers = #tpu.dot_dimension_numbers<[1], [0], [0], [1], [0, 0, 1, 1], [], []>} : vector<8x32xf32>, vector<32x96xf32>, vector<8x96xf32> -> vector<8x96xf32>
    %108 = vector.broadcast %104 : vector<1x96xf32> to vector<8x96xf32>
    %109 = arith.addf %107, %108 : vector<8x96xf32>
    %110 = vector.extract_strided_slice %109 {offsets = [0, 0], sizes = [8, 32], strides = [1, 1]} : vector<8x96xf32> to vector<8x32xf32>
    %cst_34 = arith.constant 5.000000e-01 : f32
    %111 = vector.broadcast %cst_34 : f32 to vector<8x32xf32>
    %112 = arith.mulf %110, %111 : vector<8x32xf32>
    %113 = vector.extract_strided_slice %109 {offsets = [0, 32], sizes = [8, 32], strides = [1, 1]} : vector<8x96xf32> to vector<8x32xf32>
    %114 = vector.extract_strided_slice %109 {offsets = [0, 64], sizes = [8, 32], strides = [1, 1]} : vector<8x96xf32> to vector<8x32xf32>
    %115 = vector.extract_strided_slice %112 {offsets = [0, 0], sizes = [8, 8], strides = [1, 1]} : vector<8x32xf32> to vector<8x8xf32>
    %116 = vector.extract_strided_slice %112 {offsets = [0, 8], sizes = [8, 8], strides = [1, 1]} : vector<8x32xf32> to vector<8x8xf32>
    %117 = vector.extract_strided_slice %112 {offsets = [0, 16], sizes = [8, 8], strides = [1, 1]} : vector<8x32xf32> to vector<8x8xf32>
    %118 = vector.extract_strided_slice %112 {offsets = [0, 24], sizes = [8, 8], strides = [1, 1]} : vector<8x32xf32> to vector<8x8xf32>
    %119 = vector.shape_cast %115 : vector<8x8xf32> to vector<1x8x8xf32>
    %120 = vector.shape_cast %116 : vector<8x8xf32> to vector<1x8x8xf32>
    %121 = vector.shape_cast %117 : vector<8x8xf32> to vector<1x8x8xf32>
    %122 = vector.shape_cast %118 : vector<8x8xf32> to vector<1x8x8xf32>
    %123 = tpu.concatenate %119, %120, %121, %122 in 0 : vector<1x8x8xf32>, vector<1x8x8xf32>, vector<1x8x8xf32>, vector<1x8x8xf32> -> vector<4x8x8xf32>
    %124 = vector.extract_strided_slice %113 {offsets = [0, 0], sizes = [8, 8], strides = [1, 1]} : vector<8x32xf32> to vector<8x8xf32>
    %125 = vector.extract_strided_slice %113 {offsets = [0, 8], sizes = [8, 8], strides = [1, 1]} : vector<8x32xf32> to vector<8x8xf32>
    %126 = vector.extract_strided_slice %113 {offsets = [0, 16], sizes = [8, 8], strides = [1, 1]} : vector<8x32xf32> to vector<8x8xf32>
    %127 = vector.extract_strided_slice %113 {offsets = [0, 24], sizes = [8, 8], strides = [1, 1]} : vector<8x32xf32> to vector<8x8xf32>
    %128 = vector.shape_cast %124 : vector<8x8xf32> to vector<1x8x8xf32>
    %129 = vector.shape_cast %125 : vector<8x8xf32> to vector<1x8x8xf32>
    %130 = vector.shape_cast %126 : vector<8x8xf32> to vector<1x8x8xf32>
    %131 = vector.shape_cast %127 : vector<8x8xf32> to vector<1x8x8xf32>
    %132 = tpu.concatenate %128, %129, %130, %131 in 0 : vector<1x8x8xf32>, vector<1x8x8xf32>, vector<1x8x8xf32>, vector<1x8x8xf32> -> vector<4x8x8xf32>
    %133 = vector.extract_strided_slice %114 {offsets = [0, 0], sizes = [8, 8], strides = [1, 1]} : vector<8x32xf32> to vector<8x8xf32>
    %134 = vector.extract_strided_slice %114 {offsets = [0, 8], sizes = [8, 8], strides = [1, 1]} : vector<8x32xf32> to vector<8x8xf32>
    %135 = vector.extract_strided_slice %114 {offsets = [0, 16], sizes = [8, 8], strides = [1, 1]} : vector<8x32xf32> to vector<8x8xf32>
    %136 = vector.extract_strided_slice %114 {offsets = [0, 24], sizes = [8, 8], strides = [1, 1]} : vector<8x32xf32> to vector<8x8xf32>
    %137 = vector.shape_cast %133 : vector<8x8xf32> to vector<1x8x8xf32>
    %138 = vector.shape_cast %134 : vector<8x8xf32> to vector<1x8x8xf32>
    %139 = vector.shape_cast %135 : vector<8x8xf32> to vector<1x8x8xf32>
    %140 = vector.shape_cast %136 : vector<8x8xf32> to vector<1x8x8xf32>
    %141 = tpu.concatenate %137, %138, %139, %140 in 0 : vector<1x8x8xf32>, vector<1x8x8xf32>, vector<1x8x8xf32>, vector<1x8x8xf32> -> vector<4x8x8xf32>
    "tpu.trace_start"() <{level = 10 : i32, message = "hqd,hkd->hqk"}> : () -> ()
    %cst_35 = arith.constant dense<0.000000e+00> : vector<4x8x8xf32>
    %142 = tpu.matmul %123, %132, %cst_35 {dimension_numbers = #tpu.dot_dimension_numbers<[2], [2], [1], [1], [0, 0, 0, 1, 1, 1], [0], [0]>} : vector<4x8x8xf32>, vector<4x8x8xf32>, vector<4x8x8xf32> -> vector<4x8x8xf32>
    "tpu.trace_stop"() : () -> ()
    %143 = vector.shape_cast %10 : vector<8x8xi1> to vector<1x8x8xi1>
    %cst_36 = arith.constant 9.99999971E-10 : f32
    %144 = vector.shape_cast %143 : vector<1x8x8xi1> to vector<1x8x8xi1>
    %145 = vector.broadcast %144 : vector<1x8x8xi1> to vector<4x8x8xi1>
    %146 = vector.broadcast %cst_36 : f32 to vector<4x8x8xf32>
    %147 = arith.select %145, %146, %142 : vector<4x8x8xi1>, vector<4x8x8xf32>
    %cst_37 = arith.constant dense<0xFF800000> : vector<4x8xf32>
    %148 = vector.multi_reduction <maximumf>, %147, %cst_37 [2] : vector<4x8x8xf32> to vector<4x8xf32>
    %149 = vector.shape_cast %148 : vector<4x8xf32> to vector<4x8x1xf32>
    %150 = vector.broadcast %149 : vector<4x8x1xf32> to vector<4x8x8xf32>
    %151 = arith.subf %147, %150 : vector<4x8x8xf32>
    %152 = math.exp %151 : vector<4x8x8xf32>
    %cst_38 = arith.constant dense<0.000000e+00> : vector<4x8xf32>
    %153 = vector.multi_reduction <add>, %152, %cst_38 [2] : vector<4x8x8xf32> to vector<4x8xf32>
    %154 = vector.shape_cast %153 : vector<4x8xf32> to vector<4x8x1xf32>
    %155 = tpu.reciprocal %154 {approx = true} : vector<4x8x1xf32> -> vector<4x8x1xf32>
    %156 = arith.mulf %154, %155 : vector<4x8x1xf32>
    %cst_39 = arith.constant 2.000000e+00 : f32
    %157 = vector.broadcast %cst_39 : f32 to vector<4x8x1xf32>
    %158 = arith.subf %157, %156 : vector<4x8x1xf32>
    %159 = arith.mulf %155, %158 : vector<4x8x1xf32>
    %160 = vector.broadcast %159 : vector<4x8x1xf32> to vector<4x8x8xf32>
    %161 = arith.mulf %152, %160 : vector<4x8x8xf32>
    "tpu.trace_start"() <{level = 10 : i32, message = "hqk,hkd->hqd"}> : () -> ()
    %cst_40 = arith.constant dense<0.000000e+00> : vector<4x8x8xf32>
    %162 = tpu.matmul %161, %141, %cst_40 {dimension_numbers = #tpu.dot_dimension_numbers<[2], [1], [1], [2], [0, 0, 0, 1, 1, 2], [0], [0]>} : vector<4x8x8xf32>, vector<4x8x8xf32>, vector<4x8x8xf32> -> vector<4x8x8xf32>
    "tpu.trace_stop"() : () -> ()
    %163 = vector.extract_strided_slice %162 {offsets = [0, 0, 0], sizes = [1, 8, 8], strides = [1, 1, 1]} : vector<4x8x8xf32> to vector<1x8x8xf32>
    %164 = vector.shape_cast %163 : vector<1x8x8xf32> to vector<8x8xf32>
    %165 = vector.extract_strided_slice %162 {offsets = [1, 0, 0], sizes = [1, 8, 8], strides = [1, 1, 1]} : vector<4x8x8xf32> to vector<1x8x8xf32>
    %166 = vector.shape_cast %165 : vector<1x8x8xf32> to vector<8x8xf32>
    %167 = vector.extract_strided_slice %162 {offsets = [2, 0, 0], sizes = [1, 8, 8], strides = [1, 1, 1]} : vector<4x8x8xf32> to vector<1x8x8xf32>
    %168 = vector.shape_cast %167 : vector<1x8x8xf32> to vector<8x8xf32>
    %169 = vector.extract_strided_slice %162 {offsets = [3, 0, 0], sizes = [1, 8, 8], strides = [1, 1, 1]} : vector<4x8x8xf32> to vector<1x8x8xf32>
    %170 = vector.shape_cast %169 : vector<1x8x8xf32> to vector<8x8xf32>
    %171 = tpu.concatenate %164, %166, %168, %170 in 1 : vector<8x8xf32>, vector<8x8xf32>, vector<8x8xf32>, vector<8x8xf32> -> vector<8x32xf32>
    %172 = arith.addf %171, %102 : vector<8x32xf32>
    %cst_41 = arith.constant dense<0.000000e+00> : vector<8xf32>
    %173 = vector.multi_reduction <add>, %172, %cst_41 [1] : vector<8x32xf32> to vector<8xf32>
    %174 = vector.shape_cast %173 : vector<8xf32> to vector<8x1xf32>
    %cst_42 = arith.constant 3.200000e+01 : f32
    %175 = vector.broadcast %cst_42 : f32 to vector<8x1xf32>
    %176 = arith.divf %174, %175 : vector<8x1xf32>
    %177 = vector.broadcast %176 : vector<8x1xf32> to vector<8x32xf32>
    %178 = arith.subf %172, %177 : vector<8x32xf32>
    %179 = arith.mulf %178, %178 : vector<8x32xf32>
    %cst_43 = arith.constant dense<0.000000e+00> : vector<8xf32>
    %180 = vector.multi_reduction <add>, %179, %cst_43 [1] : vector<8x32xf32> to vector<8xf32>
    %181 = vector.shape_cast %180 : vector<8xf32> to vector<8x1xf32>
    %cst_44 = arith.constant 3.200000e+01 : f32
    %182 = vector.broadcast %cst_44 : f32 to vector<8x1xf32>
    %183 = arith.divf %181, %182 : vector<8x1xf32>
    %184 = vector.broadcast %176 : vector<8x1xf32> to vector<8x32xf32>
    %185 = arith.subf %172, %184 : vector<8x32xf32>
    %cst_45 = arith.constant 9.99999974E-6 : f32
    %186 = vector.broadcast %cst_45 : f32 to vector<8x1xf32>
    %187 = arith.addf %183, %186 : vector<8x1xf32>
    %188 = math.rsqrt %187 : vector<8x1xf32>
    %189 = vector.broadcast %188 : vector<8x1xf32> to vector<8x32xf32>
    %190 = arith.mulf %185, %189 : vector<8x32xf32>
    %191 = vector.broadcast %105 : vector<1x32xf32> to vector<8x32xf32>
    %192 = arith.mulf %190, %191 : vector<8x32xf32>
    %193 = vector.broadcast %106 : vector<1x32xf32> to vector<8x32xf32>
    %194 = arith.addf %192, %193 : vector<8x32xf32>
    %c0_46 = arith.constant 0 : index
    %c0_47 = arith.constant 0 : index
    %195 = vector.load %arg10[%c0_46, %c0_47] : memref<32x64xf32, #tpu.memory_space<vmem>>, vector<32x64xf32>
    %cst_48 = arith.constant dense<0.000000e+00> : vector<8x64xf32>
    %196 = tpu.matmul %194, %195, %cst_48 {dimension_numbers = #tpu.dot_dimension_numbers<[1], [0], [0], [1], [0, 0, 1, 1], [], []>} : vector<8x32xf32>, vector<32x64xf32>, vector<8x64xf32> -> vector<8x64xf32>
    %c0_49 = arith.constant 0 : index
    %c0_50 = arith.constant 0 : index
    %197 = vector.load %arg11[%c0_49, %c0_50] : memref<1x64xf32, #tpu.memory_space<vmem>>, vector<1x64xf32>
    %198 = vector.broadcast %197 : vector<1x64xf32> to vector<8x64xf32>
    %199 = arith.addf %196, %198 : vector<8x64xf32>
    %cst_51 = arith.constant 0.000000e+00 : f32
    %200 = vector.broadcast %cst_51 : f32 to vector<8x64xf32>
    %201 = arith.maximumf %199, %200 : vector<8x64xf32>
    %c0_52 = arith.constant 0 : index
    %c0_53 = arith.constant 0 : index
    %202 = vector.load %arg12[%c0_52, %c0_53] : memref<64x32xf32, #tpu.memory_space<vmem>>, vector<64x32xf32>
    %cst_54 = arith.constant dense<0.000000e+00> : vector<8x32xf32>
    %203 = tpu.matmul %201, %202, %cst_54 {dimension_numbers = #tpu.dot_dimension_numbers<[1], [0], [0], [1], [0, 0, 1, 1], [], []>} : vector<8x64xf32>, vector<64x32xf32>, vector<8x32xf32> -> vector<8x32xf32>
    %c0_55 = arith.constant 0 : index
    %c0_56 = arith.constant 0 : index
    %204 = vector.load %arg13[%c0_55, %c0_56] : memref<1x32xf32, #tpu.memory_space<vmem>>, vector<1x32xf32>
    %205 = vector.broadcast %204 : vector<1x32xf32> to vector<8x32xf32>
    %206 = arith.addf %203, %205 : vector<8x32xf32>
    %207 = arith.addf %206, %194 : vector<8x32xf32>
    %c0_57 = arith.constant 0 : index
    %c0_58 = arith.constant 0 : index
    %208 = vector.load %arg14[%c0_57, %c0_58] : memref<1x32xf32, #tpu.memory_space<vmem>>, vector<1x32xf32>
    %c0_59 = arith.constant 0 : index
    %c0_60 = arith.constant 0 : index
    %209 = vector.load %arg15[%c0_59, %c0_60] : memref<1x32xf32, #tpu.memory_space<vmem>>, vector<1x32xf32>
    %cst_61 = arith.constant dense<0.000000e+00> : vector<8xf32>
    %210 = vector.multi_reduction <add>, %207, %cst_61 [1] : vector<8x32xf32> to vector<8xf32>
    %211 = vector.shape_cast %210 : vector<8xf32> to vector<8x1xf32>
    %cst_62 = arith.constant 3.200000e+01 : f32
    %212 = vector.broadcast %cst_62 : f32 to vector<8x1xf32>
    %213 = arith.divf %211, %212 : vector<8x1xf32>
    %214 = vector.broadcast %213 : vector<8x1xf32> to vector<8x32xf32>
    %215 = arith.subf %207, %214 : vector<8x32xf32>
    %216 = arith.mulf %215, %215 : vector<8x32xf32>
    %cst_63 = arith.constant dense<0.000000e+00> : vector<8xf32>
    %217 = vector.multi_reduction <add>, %216, %cst_63 [1] : vector<8x32xf32> to vector<8xf32>
    %218 = vector.shape_cast %217 : vector<8xf32> to vector<8x1xf32>
    %cst_64 = arith.constant 3.200000e+01 : f32
    %219 = vector.broadcast %cst_64 : f32 to vector<8x1xf32>
    %220 = arith.divf %218, %219 : vector<8x1xf32>
    %221 = vector.broadcast %213 : vector<8x1xf32> to vector<8x32xf32>
    %222 = arith.subf %207, %221 : vector<8x32xf32>
    %cst_65 = arith.constant 9.99999974E-6 : f32
    %223 = vector.broadcast %cst_65 : f32 to vector<8x1xf32>
    %224 = arith.addf %220, %223 : vector<8x1xf32>
    %225 = math.rsqrt %224 : vector<8x1xf32>
    %226 = vector.broadcast %225 : vector<8x1xf32> to vector<8x32xf32>
    %227 = arith.mulf %222, %226 : vector<8x32xf32>
    %228 = vector.broadcast %208 : vector<1x32xf32> to vector<8x32xf32>
    %229 = arith.mulf %227, %228 : vector<8x32xf32>
    %230 = vector.broadcast %209 : vector<1x32xf32> to vector<8x32xf32>
    %231 = arith.addf %229, %230 : vector<8x32xf32>
    %c0_66 = arith.constant 0 : index
    %c0_67 = arith.constant 0 : index
    %c0_68 = arith.constant 0 : index
    %232 = vector.load %arg16[%c0_66, %c0_67, %c0_68] : memref<2x8x32xf32, #tpu.memory_space<vmem>>, vector<1x8x32xf32>
    %233 = vector.shape_cast %232 : vector<1x8x32xf32> to vector<8x32xf32>
    %234 = vector.shape_cast %231 : vector<8x32xf32> to vector<1x8x32xf32>
    tpu.vector_store %arg16[%c0_66, %c0_67, %c0_68], %234 {strides = array<i32>} : memref<2x8x32xf32, #tpu.memory_space<vmem>>, vector<1x8x32xf32>,
    %c1 = arith.constant 1 : index
    %c0_69 = arith.constant 0 : index
    %c0_70 = arith.constant 0 : index
    %235 = vector.load %arg0[%c1, %c0_69, %c0_70] : memref<2x8x32xf32, #tpu.memory_space<vmem>>, vector<1x8x32xf32>
    %236 = vector.shape_cast %235 : vector<1x8x32xf32> to vector<8x32xf32>
    %c1_71 = arith.constant 1 : index
    %c0_72 = arith.constant 0 : index
    %c0_73 = arith.constant 0 : index
    %237 = vector.load %arg1[%c1_71, %c0_72, %c0_73] : memref<2x8x1xi32, #tpu.memory_space<vmem>>, vector<1x8x1xi32>
    %238 = vector.shape_cast %237 : vector<1x8x1xi32> to vector<8x1xi32>
    %c0_i32_74 = arith.constant 0 : i32
    %239 = vector.broadcast %c0_i32_74 : i32 to vector<8x1xi32>
    %240 = arith.cmpi sgt, %238, %239 : vector<8x1xi32>
    %241 = vector.broadcast %240 : vector<8x1xi1> to vector<8x8xi1>
    %242 = arith.ori %241, %2 : vector<8x8xi1>
    %c0_75 = arith.constant 0 : index
    %c0_76 = arith.constant 0 : index
    %243 = vector.load %arg2[%c0_75, %c0_76] : memref<32x96xf32, #tpu.memory_space<vmem>>, vector<32x96xf32>
    %c0_77 = arith.constant 0 : index
    %c0_78 = arith.constant 0 : index
    %244 = vector.load %arg3[%c0_77, %c0_78] : memref<1x96xf32, #tpu.memory_space<vmem>>, vector<1x96xf32>
    %c0_79 = arith.constant 0 : index
    %c0_80 = arith.constant 0 : index
    %245 = vector.load %arg4[%c0_79, %c0_80] : memref<1x32xf32, #tpu.memory_space<vmem>>, vector<1x32xf32>
    %c0_81 = arith.constant 0 : index
    %c0_82 = arith.constant 0 : index
    %246 = vector.load %arg5[%c0_81, %c0_82] : memref<1x32xf32, #tpu.memory_space<vmem>>, vector<1x32xf32>
    %cst_83 = arith.constant dense<0.000000e+00> : vector<8x96xf32>
    %247 = tpu.matmul %236, %243, %cst_83 {dimension_numbers = #tpu.dot_dimension_numbers<[1], [0], [0], [1], [0, 0, 1, 1], [], []>} : vector<8x32xf32>, vector<32x96xf32>, vector<8x96xf32> -> vector<8x96xf32>
    %248 = vector.broadcast %244 : vector<1x96xf32> to vector<8x96xf32>
    %249 = arith.addf %247, %248 : vector<8x96xf32>
    %250 = vector.extract_strided_slice %249 {offsets = [0, 0], sizes = [8, 32], strides = [1, 1]} : vector<8x96xf32> to vector<8x32xf32>
    %cst_84 = arith.constant 5.000000e-01 : f32
    %251 = vector.broadcast %cst_84 : f32 to vector<8x32xf32>
    %252 = arith.mulf %250, %251 : vector<8x32xf32>
    %253 = vector.extract_strided_slice %249 {offsets = [0, 32], sizes = [8, 32], strides = [1, 1]} : vector<8x96xf32> to vector<8x32xf32>
    %254 = vector.extract_strided_slice %249 {offsets = [0, 64], sizes = [8, 32], strides = [1, 1]} : vector<8x96xf32> to vector<8x32xf32>
    %255 = vector.extract_strided_slice %252 {offsets = [0, 0], sizes = [8, 8], strides = [1, 1]} : vector<8x32xf32> to vector<8x8xf32>
    %256 = vector.extract_strided_slice %252 {offsets = [0, 8], sizes = [8, 8], strides = [1, 1]} : vector<8x32xf32> to vector<8x8xf32>
    %257 = vector.extract_strided_slice %252 {offsets = [0, 16], sizes = [8, 8], strides = [1, 1]} : vector<8x32xf32> to vector<8x8xf32>
    %258 = vector.extract_strided_slice %252 {offsets = [0, 24], sizes = [8, 8], strides = [1, 1]} : vector<8x32xf32> to vector<8x8xf32>
    %259 = vector.shape_cast %255 : vector<8x8xf32> to vector<1x8x8xf32>
    %260 = vector.shape_cast %256 : vector<8x8xf32> to vector<1x8x8xf32>
    %261 = vector.shape_cast %257 : vector<8x8xf32> to vector<1x8x8xf32>
    %262 = vector.shape_cast %258 : vector<8x8xf32> to vector<1x8x8xf32>
    %263 = tpu.concatenate %259, %260, %261, %262 in 0 : vector<1x8x8xf32>, vector<1x8x8xf32>, vector<1x8x8xf32>, vector<1x8x8xf32> -> vector<4x8x8xf32>
    %264 = vector.extract_strided_slice %253 {offsets = [0, 0], sizes = [8, 8], strides = [1, 1]} : vector<8x32xf32> to vector<8x8xf32>
    %265 = vector.extract_strided_slice %253 {offsets = [0, 8], sizes = [8, 8], strides = [1, 1]} : vector<8x32xf32> to vector<8x8xf32>
    %266 = vector.extract_strided_slice %253 {offsets = [0, 16], sizes = [8, 8], strides = [1, 1]} : vector<8x32xf32> to vector<8x8xf32>
    %267 = vector.extract_strided_slice %253 {offsets = [0, 24], sizes = [8, 8], strides = [1, 1]} : vector<8x32xf32> to vector<8x8xf32>
    %268 = vector.shape_cast %264 : vector<8x8xf32> to vector<1x8x8xf32>
    %269 = vector.shape_cast %265 : vector<8x8xf32> to vector<1x8x8xf32>
    %270 = vector.shape_cast %266 : vector<8x8xf32> to vector<1x8x8xf32>
    %271 = vector.shape_cast %267 : vector<8x8xf32> to vector<1x8x8xf32>
    %272 = tpu.concatenate %268, %269, %270, %271 in 0 : vector<1x8x8xf32>, vector<1x8x8xf32>, vector<1x8x8xf32>, vector<1x8x8xf32> -> vector<4x8x8xf32>
    %273 = vector.extract_strided_slice %254 {offsets = [0, 0], sizes = [8, 8], strides = [1, 1]} : vector<8x32xf32> to vector<8x8xf32>
    %274 = vector.extract_strided_slice %254 {offsets = [0, 8], sizes = [8, 8], strides = [1, 1]} : vector<8x32xf32> to vector<8x8xf32>
    %275 = vector.extract_strided_slice %254 {offsets = [0, 16], sizes = [8, 8], strides = [1, 1]} : vector<8x32xf32> to vector<8x8xf32>
    %276 = vector.extract_strided_slice %254 {offsets = [0, 24], sizes = [8, 8], strides = [1, 1]} : vector<8x32xf32> to vector<8x8xf32>
    %277 = vector.shape_cast %273 : vector<8x8xf32> to vector<1x8x8xf32>
    %278 = vector.shape_cast %274 : vector<8x8xf32> to vector<1x8x8xf32>
    %279 = vector.shape_cast %275 : vector<8x8xf32> to vector<1x8x8xf32>
    %280 = vector.shape_cast %276 : vector<8x8xf32> to vector<1x8x8xf32>
    %281 = tpu.concatenate %277, %278, %279, %280 in 0 : vector<1x8x8xf32>, vector<1x8x8xf32>, vector<1x8x8xf32>, vector<1x8x8xf32> -> vector<4x8x8xf32>
    "tpu.trace_start"() <{level = 10 : i32, message = "hqd,hkd->hqk"}> : () -> ()
    %cst_85 = arith.constant dense<0.000000e+00> : vector<4x8x8xf32>
    %282 = tpu.matmul %263, %272, %cst_85 {dimension_numbers = #tpu.dot_dimension_numbers<[2], [2], [1], [1], [0, 0, 0, 1, 1, 1], [0], [0]>} : vector<4x8x8xf32>, vector<4x8x8xf32>, vector<4x8x8xf32> -> vector<4x8x8xf32>
    "tpu.trace_stop"() : () -> ()
    %283 = vector.shape_cast %242 : vector<8x8xi1> to vector<1x8x8xi1>
    %cst_86 = arith.constant 9.99999971E-10 : f32
    %284 = vector.shape_cast %283 : vector<1x8x8xi1> to vector<1x8x8xi1>
    %285 = vector.broadcast %284 : vector<1x8x8xi1> to vector<4x8x8xi1>
    %286 = vector.broadcast %cst_86 : f32 to vector<4x8x8xf32>
    %287 = arith.select %285, %286, %282 : vector<4x8x8xi1>, vector<4x8x8xf32>
    %cst_87 = arith.constant dense<0xFF800000> : vector<4x8xf32>
    %288 = vector.multi_reduction <maximumf>, %287, %cst_87 [2] : vector<4x8x8xf32> to vector<4x8xf32>
    %289 = vector.shape_cast %288 : vector<4x8xf32> to vector<4x8x1xf32>
    %290 = vector.broadcast %289 : vector<4x8x1xf32> to vector<4x8x8xf32>
    %291 = arith.subf %287, %290 : vector<4x8x8xf32>
    %292 = math.exp %291 : vector<4x8x8xf32>
    %cst_88 = arith.constant dense<0.000000e+00> : vector<4x8xf32>
    %293 = vector.multi_reduction <add>, %292, %cst_88 [2] : vector<4x8x8xf32> to vector<4x8xf32>
    %294 = vector.shape_cast %293 : vector<4x8xf32> to vector<4x8x1xf32>
    %295 = tpu.reciprocal %294 {approx = true} : vector<4x8x1xf32> -> vector<4x8x1xf32>
    %296 = arith.mulf %294, %295 : vector<4x8x1xf32>
    %cst_89 = arith.constant 2.000000e+00 : f32
    %297 = vector.broadcast %cst_89 : f32 to vector<4x8x1xf32>
    %298 = arith.subf %297, %296 : vector<4x8x1xf32>
    %299 = arith.mulf %295, %298 : vector<4x8x1xf32>
    %300 = vector.broadcast %299 : vector<4x8x1xf32> to vector<4x8x8xf32>
    %301 = arith.mulf %292, %300 : vector<4x8x8xf32>
    "tpu.trace_start"() <{level = 10 : i32, message = "hqk,hkd->hqd"}> : () -> ()
    %cst_90 = arith.constant dense<0.000000e+00> : vector<4x8x8xf32>
    %302 = tpu.matmul %301, %281, %cst_90 {dimension_numbers = #tpu.dot_dimension_numbers<[2], [1], [1], [2], [0, 0, 0, 1, 1, 2], [0], [0]>} : vector<4x8x8xf32>, vector<4x8x8xf32>, vector<4x8x8xf32> -> vector<4x8x8xf32>
    "tpu.trace_stop"() : () -> ()
    %303 = vector.extract_strided_slice %302 {offsets = [0, 0, 0], sizes = [1, 8, 8], strides = [1, 1, 1]} : vector<4x8x8xf32> to vector<1x8x8xf32>
    %304 = vector.shape_cast %303 : vector<1x8x8xf32> to vector<8x8xf32>
    %305 = vector.extract_strided_slice %302 {offsets = [1, 0, 0], sizes = [1, 8, 8], strides = [1, 1, 1]} : vector<4x8x8xf32> to vector<1x8x8xf32>
    %306 = vector.shape_cast %305 : vector<1x8x8xf32> to vector<8x8xf32>
    %307 = vector.extract_strided_slice %302 {offsets = [2, 0, 0], sizes = [1, 8, 8], strides = [1, 1, 1]} : vector<4x8x8xf32> to vector<1x8x8xf32>
    %308 = vector.shape_cast %307 : vector<1x8x8xf32> to vector<8x8xf32>
    %309 = vector.extract_strided_slice %302 {offsets = [3, 0, 0], sizes = [1, 8, 8], strides = [1, 1, 1]} : vector<4x8x8xf32> to vector<1x8x8xf32>
    %310 = vector.shape_cast %309 : vector<1x8x8xf32> to vector<8x8xf32>
    %311 = tpu.concatenate %304, %306, %308, %310 in 1 : vector<8x8xf32>, vector<8x8xf32>, vector<8x8xf32>, vector<8x8xf32> -> vector<8x32xf32>
    %312 = arith.addf %311, %236 : vector<8x32xf32>
    %cst_91 = arith.constant dense<0.000000e+00> : vector<8xf32>
    %313 = vector.multi_reduction <add>, %312, %cst_91 [1] : vector<8x32xf32> to vector<8xf32>
    %314 = vector.shape_cast %313 : vector<8xf32> to vector<8x1xf32>
    %cst_92 = arith.constant 3.200000e+01 : f32
    %315 = vector.broadcast %cst_92 : f32 to vector<8x1xf32>
    %316 = arith.divf %314, %315 : vector<8x1xf32>
    %317 = vector.broadcast %316 : vector<8x1xf32> to vector<8x32xf32>
    %318 = arith.subf %312, %317 : vector<8x32xf32>
    %319 = arith.mulf %318, %318 : vector<8x32xf32>
    %cst_93 = arith.constant dense<0.000000e+00> : vector<8xf32>
    %320 = vector.multi_reduction <add>, %319, %cst_93 [1] : vector<8x32xf32> to vector<8xf32>
    %321 = vector.shape_cast %320 : vector<8xf32> to vector<8x1xf32>
    %cst_94 = arith.constant 3.200000e+01 : f32
    %322 = vector.broadcast %cst_94 : f32 to vector<8x1xf32>
    %323 = arith.divf %321, %322 : vector<8x1xf32>
    %324 = vector.broadcast %316 : vector<8x1xf32> to vector<8x32xf32>
    %325 = arith.subf %312, %324 : vector<8x32xf32>
    %cst_95 = arith.constant 9.99999974E-6 : f32
    %326 = vector.broadcast %cst_95 : f32 to vector<8x1xf32>
    %327 = arith.addf %323, %326 : vector<8x1xf32>
    %328 = math.rsqrt %327 : vector<8x1xf32>
    %329 = vector.broadcast %328 : vector<8x1xf32> to vector<8x32xf32>
    %330 = arith.mulf %325, %329 : vector<8x32xf32>
    %331 = vector.broadcast %245 : vector<1x32xf32> to vector<8x32xf32>
    %332 = arith.mulf %330, %331 : vector<8x32xf32>
    %333 = vector.broadcast %246 : vector<1x32xf32> to vector<8x32xf32>
    %334 = arith.addf %332, %333 : vector<8x32xf32>
    %c0_96 = arith.constant 0 : index
    %c0_97 = arith.constant 0 : index
    %335 = vector.load %arg6[%c0_96, %c0_97] : memref<32x96xf32, #tpu.memory_space<vmem>>, vector<32x96xf32>
    %c0_98 = arith.constant 0 : index
    %c0_99 = arith.constant 0 : index
    %336 = vector.load %arg7[%c0_98, %c0_99] : memref<1x96xf32, #tpu.memory_space<vmem>>, vector<1x96xf32>
    %c0_100 = arith.constant 0 : index
    %c0_101 = arith.constant 0 : index
    %337 = vector.load %arg8[%c0_100, %c0_101] : memref<1x32xf32, #tpu.memory_space<vmem>>, vector<1x32xf32>
    %c0_102 = arith.constant 0 : index
    %c0_103 = arith.constant 0 : index
    %338 = vector.load %arg9[%c0_102, %c0_103] : memref<1x32xf32, #tpu.memory_space<vmem>>, vector<1x32xf32>
    %cst_104 = arith.constant dense<0.000000e+00> : vector<8x96xf32>
    %339 = tpu.matmul %334, %335, %cst_104 {dimension_numbers = #tpu.dot_dimension_numbers<[1], [0], [0], [1], [0, 0, 1, 1], [], []>} : vector<8x32xf32>, vector<32x96xf32>, vector<8x96xf32> -> vector<8x96xf32>
    %340 = vector.broadcast %336 : vector<1x96xf32> to vector<8x96xf32>
    %341 = arith.addf %339, %340 : vector<8x96xf32>
    %342 = vector.extract_strided_slice %341 {offsets = [0, 0], sizes = [8, 32], strides = [1, 1]} : vector<8x96xf32> to vector<8x32xf32>
    %cst_105 = arith.constant 5.000000e-01 : f32
    %343 = vector.broadcast %cst_105 : f32 to vector<8x32xf32>
    %344 = arith.mulf %342, %343 : vector<8x32xf32>
    %345 = vector.extract_strided_slice %341 {offsets = [0, 32], sizes = [8, 32], strides = [1, 1]} : vector<8x96xf32> to vector<8x32xf32>
    %346 = vector.extract_strided_slice %341 {offsets = [0, 64], sizes = [8, 32], strides = [1, 1]} : vector<8x96xf32> to vector<8x32xf32>
    %347 = vector.extract_strided_slice %344 {offsets = [0, 0], sizes = [8, 8], strides = [1, 1]} : vector<8x32xf32> to vector<8x8xf32>
    %348 = vector.extract_strided_slice %344 {offsets = [0, 8], sizes = [8, 8], strides = [1, 1]} : vector<8x32xf32> to vector<8x8xf32>
    %349 = vector.extract_strided_slice %344 {offsets = [0, 16], sizes = [8, 8], strides = [1, 1]} : vector<8x32xf32> to vector<8x8xf32>
    %350 = vector.extract_strided_slice %344 {offsets = [0, 24], sizes = [8, 8], strides = [1, 1]} : vector<8x32xf32> to vector<8x8xf32>
    %351 = vector.shape_cast %347 : vector<8x8xf32> to vector<1x8x8xf32>
    %352 = vector.shape_cast %348 : vector<8x8xf32> to vector<1x8x8xf32>
    %353 = vector.shape_cast %349 : vector<8x8xf32> to vector<1x8x8xf32>
    %354 = vector.shape_cast %350 : vector<8x8xf32> to vector<1x8x8xf32>
    %355 = tpu.concatenate %351, %352, %353, %354 in 0 : vector<1x8x8xf32>, vector<1x8x8xf32>, vector<1x8x8xf32>, vector<1x8x8xf32> -> vector<4x8x8xf32>
    %356 = vector.extract_strided_slice %345 {offsets = [0, 0], sizes = [8, 8], strides = [1, 1]} : vector<8x32xf32> to vector<8x8xf32>
    %357 = vector.extract_strided_slice %345 {offsets = [0, 8], sizes = [8, 8], strides = [1, 1]} : vector<8x32xf32> to vector<8x8xf32>
    %358 = vector.extract_strided_slice %345 {offsets = [0, 16], sizes = [8, 8], strides = [1, 1]} : vector<8x32xf32> to vector<8x8xf32>
    %359 = vector.extract_strided_slice %345 {offsets = [0, 24], sizes = [8, 8], strides = [1, 1]} : vector<8x32xf32> to vector<8x8xf32>
    %360 = vector.shape_cast %356 : vector<8x8xf32> to vector<1x8x8xf32>
    %361 = vector.shape_cast %357 : vector<8x8xf32> to vector<1x8x8xf32>
    %362 = vector.shape_cast %358 : vector<8x8xf32> to vector<1x8x8xf32>
    %363 = vector.shape_cast %359 : vector<8x8xf32> to vector<1x8x8xf32>
    %364 = tpu.concatenate %360, %361, %362, %363 in 0 : vector<1x8x8xf32>, vector<1x8x8xf32>, vector<1x8x8xf32>, vector<1x8x8xf32> -> vector<4x8x8xf32>
    %365 = vector.extract_strided_slice %346 {offsets = [0, 0], sizes = [8, 8], strides = [1, 1]} : vector<8x32xf32> to vector<8x8xf32>
    %366 = vector.extract_strided_slice %346 {offsets = [0, 8], sizes = [8, 8], strides = [1, 1]} : vector<8x32xf32> to vector<8x8xf32>
    %367 = vector.extract_strided_slice %346 {offsets = [0, 16], sizes = [8, 8], strides = [1, 1]} : vector<8x32xf32> to vector<8x8xf32>
    %368 = vector.extract_strided_slice %346 {offsets = [0, 24], sizes = [8, 8], strides = [1, 1]} : vector<8x32xf32> to vector<8x8xf32>
    %369 = vector.shape_cast %365 : vector<8x8xf32> to vector<1x8x8xf32>
    %370 = vector.shape_cast %366 : vector<8x8xf32> to vector<1x8x8xf32>
    %371 = vector.shape_cast %367 : vector<8x8xf32> to vector<1x8x8xf32>
    %372 = vector.shape_cast %368 : vector<8x8xf32> to vector<1x8x8xf32>
    %373 = tpu.concatenate %369, %370, %371, %372 in 0 : vector<1x8x8xf32>, vector<1x8x8xf32>, vector<1x8x8xf32>, vector<1x8x8xf32> -> vector<4x8x8xf32>
    "tpu.trace_start"() <{level = 10 : i32, message = "hqd,hkd->hqk"}> : () -> ()
    %cst_106 = arith.constant dense<0.000000e+00> : vector<4x8x8xf32>
    %374 = tpu.matmul %355, %364, %cst_106 {dimension_numbers = #tpu.dot_dimension_numbers<[2], [2], [1], [1], [0, 0, 0, 1, 1, 1], [0], [0]>} : vector<4x8x8xf32>, vector<4x8x8xf32>, vector<4x8x8xf32> -> vector<4x8x8xf32>
    "tpu.trace_stop"() : () -> ()
    %375 = vector.shape_cast %242 : vector<8x8xi1> to vector<1x8x8xi1>
    %cst_107 = arith.constant 9.99999971E-10 : f32
    %376 = vector.shape_cast %375 : vector<1x8x8xi1> to vector<1x8x8xi1>
    %377 = vector.broadcast %376 : vector<1x8x8xi1> to vector<4x8x8xi1>
    %378 = vector.broadcast %cst_107 : f32 to vector<4x8x8xf32>
    %379 = arith.select %377, %378, %374 : vector<4x8x8xi1>, vector<4x8x8xf32>
    %cst_108 = arith.constant dense<0xFF800000> : vector<4x8xf32>
    %380 = vector.multi_reduction <maximumf>, %379, %cst_108 [2] : vector<4x8x8xf32> to vector<4x8xf32>
    %381 = vector.shape_cast %380 : vector<4x8xf32> to vector<4x8x1xf32>
    %382 = vector.broadcast %381 : vector<4x8x1xf32> to vector<4x8x8xf32>
    %383 = arith.subf %379, %382 : vector<4x8x8xf32>
    %384 = math.exp %383 : vector<4x8x8xf32>
    %cst_109 = arith.constant dense<0.000000e+00> : vector<4x8xf32>
    %385 = vector.multi_reduction <add>, %384, %cst_109 [2] : vector<4x8x8xf32> to vector<4x8xf32>
    %386 = vector.shape_cast %385 : vector<4x8xf32> to vector<4x8x1xf32>
    %387 = tpu.reciprocal %386 {approx = true} : vector<4x8x1xf32> -> vector<4x8x1xf32>
    %388 = arith.mulf %386, %387 : vector<4x8x1xf32>
    %cst_110 = arith.constant 2.000000e+00 : f32
    %389 = vector.broadcast %cst_110 : f32 to vector<4x8x1xf32>
    %390 = arith.subf %389, %388 : vector<4x8x1xf32>
    %391 = arith.mulf %387, %390 : vector<4x8x1xf32>
    %392 = vector.broadcast %391 : vector<4x8x1xf32> to vector<4x8x8xf32>
    %393 = arith.mulf %384, %392 : vector<4x8x8xf32>
    "tpu.trace_start"() <{level = 10 : i32, message = "hqk,hkd->hqd"}> : () -> ()
    %cst_111 = arith.constant dense<0.000000e+00> : vector<4x8x8xf32>
    %394 = tpu.matmul %393, %373, %cst_111 {dimension_numbers = #tpu.dot_dimension_numbers<[2], [1], [1], [2], [0, 0, 0, 1, 1, 2], [0], [0]>} : vector<4x8x8xf32>, vector<4x8x8xf32>, vector<4x8x8xf32> -> vector<4x8x8xf32>
    "tpu.trace_stop"() : () -> ()
    %395 = vector.extract_strided_slice %394 {offsets = [0, 0, 0], sizes = [1, 8, 8], strides = [1, 1, 1]} : vector<4x8x8xf32> to vector<1x8x8xf32>
    %396 = vector.shape_cast %395 : vector<1x8x8xf32> to vector<8x8xf32>
    %397 = vector.extract_strided_slice %394 {offsets = [1, 0, 0], sizes = [1, 8, 8], strides = [1, 1, 1]} : vector<4x8x8xf32> to vector<1x8x8xf32>
    %398 = vector.shape_cast %397 : vector<1x8x8xf32> to vector<8x8xf32>
    %399 = vector.extract_strided_slice %394 {offsets = [2, 0, 0], sizes = [1, 8, 8], strides = [1, 1, 1]} : vector<4x8x8xf32> to vector<1x8x8xf32>
    %400 = vector.shape_cast %399 : vector<1x8x8xf32> to vector<8x8xf32>
    %401 = vector.extract_strided_slice %394 {offsets = [3, 0, 0], sizes = [1, 8, 8], strides = [1, 1, 1]} : vector<4x8x8xf32> to vector<1x8x8xf32>
    %402 = vector.shape_cast %401 : vector<1x8x8xf32> to vector<8x8xf32>
    %403 = tpu.concatenate %396, %398, %400, %402 in 1 : vector<8x8xf32>, vector<8x8xf32>, vector<8x8xf32>, vector<8x8xf32> -> vector<8x32xf32>
    %404 = arith.addf %403, %334 : vector<8x32xf32>
    %cst_112 = arith.constant dense<0.000000e+00> : vector<8xf32>
    %405 = vector.multi_reduction <add>, %404, %cst_112 [1] : vector<8x32xf32> to vector<8xf32>
    %406 = vector.shape_cast %405 : vector<8xf32> to vector<8x1xf32>
    %cst_113 = arith.constant 3.200000e+01 : f32
    %407 = vector.broadcast %cst_113 : f32 to vector<8x1xf32>
    %408 = arith.divf %406, %407 : vector<8x1xf32>
    %409 = vector.broadcast %408 : vector<8x1xf32> to vector<8x32xf32>
    %410 = arith.subf %404, %409 : vector<8x32xf32>
    %411 = arith.mulf %410, %410 : vector<8x32xf32>
    %cst_114 = arith.constant dense<0.000000e+00> : vector<8xf32>
    %412 = vector.multi_reduction <add>, %411, %cst_114 [1] : vector<8x32xf32> to vector<8xf32>
    %413 = vector.shape_cast %412 : vector<8xf32> to vector<8x1xf32>
    %cst_115 = arith.constant 3.200000e+01 : f32
    %414 = vector.broadcast %cst_115 : f32 to vector<8x1xf32>
    %415 = arith.divf %413, %414 : vector<8x1xf32>
    %416 = vector.broadcast %408 : vector<8x1xf32> to vector<8x32xf32>
    %417 = arith.subf %404, %416 : vector<8x32xf32>
    %cst_116 = arith.constant 9.99999974E-6 : f32
    %418 = vector.broadcast %cst_116 : f32 to vector<8x1xf32>
    %419 = arith.addf %415, %418 : vector<8x1xf32>
    %420 = math.rsqrt %419 : vector<8x1xf32>
    %421 = vector.broadcast %420 : vector<8x1xf32> to vector<8x32xf32>
    %422 = arith.mulf %417, %421 : vector<8x32xf32>
    %423 = vector.broadcast %337 : vector<1x32xf32> to vector<8x32xf32>
    %424 = arith.mulf %422, %423 : vector<8x32xf32>
    %425 = vector.broadcast %338 : vector<1x32xf32> to vector<8x32xf32>
    %426 = arith.addf %424, %425 : vector<8x32xf32>
    %c0_117 = arith.constant 0 : index
    %c0_118 = arith.constant 0 : index
    %427 = vector.load %arg10[%c0_117, %c0_118] : memref<32x64xf32, #tpu.memory_space<vmem>>, vector<32x64xf32>
    %cst_119 = arith.constant dense<0.000000e+00> : vector<8x64xf32>
    %428 = tpu.matmul %426, %427, %cst_119 {dimension_numbers = #tpu.dot_dimension_numbers<[1], [0], [0], [1], [0, 0, 1, 1], [], []>} : vector<8x32xf32>, vector<32x64xf32>, vector<8x64xf32> -> vector<8x64xf32>
    %c0_120 = arith.constant 0 : index
    %c0_121 = arith.constant 0 : index
    %429 = vector.load %arg11[%c0_120, %c0_121] : memref<1x64xf32, #tpu.memory_space<vmem>>, vector<1x64xf32>
    %430 = vector.broadcast %429 : vector<1x64xf32> to vector<8x64xf32>
    %431 = arith.addf %428, %430 : vector<8x64xf32>
    %cst_122 = arith.constant 0.000000e+00 : f32
    %432 = vector.broadcast %cst_122 : f32 to vector<8x64xf32>
    %433 = arith.maximumf %431, %432 : vector<8x64xf32>
    %c0_123 = arith.constant 0 : index
    %c0_124 = arith.constant 0 : index
    %434 = vector.load %arg12[%c0_123, %c0_124] : memref<64x32xf32, #tpu.memory_space<vmem>>, vector<64x32xf32>
    %cst_125 = arith.constant dense<0.000000e+00> : vector<8x32xf32>
    %435 = tpu.matmul %433, %434, %cst_125 {dimension_numbers = #tpu.dot_dimension_numbers<[1], [0], [0], [1], [0, 0, 1, 1], [], []>} : vector<8x64xf32>, vector<64x32xf32>, vector<8x32xf32> -> vector<8x32xf32>
    %c0_126 = arith.constant 0 : index
    %c0_127 = arith.constant 0 : index
    %436 = vector.load %arg13[%c0_126, %c0_127] : memref<1x32xf32, #tpu.memory_space<vmem>>, vector<1x32xf32>
    %437 = vector.broadcast %436 : vector<1x32xf32> to vector<8x32xf32>
    %438 = arith.addf %435, %437 : vector<8x32xf32>
    %439 = arith.addf %438, %426 : vector<8x32xf32>
    %c0_128 = arith.constant 0 : index
    %c0_129 = arith.constant 0 : index
    %440 = vector.load %arg14[%c0_128, %c0_129] : memref<1x32xf32, #tpu.memory_space<vmem>>, vector<1x32xf32>
    %c0_130 = arith.constant 0 : index
    %c0_131 = arith.constant 0 : index
    %441 = vector.load %arg15[%c0_130, %c0_131] : memref<1x32xf32, #tpu.memory_space<vmem>>, vector<1x32xf32>
    %cst_132 = arith.constant dense<0.000000e+00> : vector<8xf32>
    %442 = vector.multi_reduction <add>, %439, %cst_132 [1] : vector<8x32xf32> to vector<8xf32>
    %443 = vector.shape_cast %442 : vector<8xf32> to vector<8x1xf32>
    %cst_133 = arith.constant 3.200000e+01 : f32
    %444 = vector.broadcast %cst_133 : f32 to vector<8x1xf32>
    %445 = arith.divf %443, %444 : vector<8x1xf32>
    %446 = vector.broadcast %445 : vector<8x1xf32> to vector<8x32xf32>
    %447 = arith.subf %439, %446 : vector<8x32xf32>
    %448 = arith.mulf %447, %447 : vector<8x32xf32>
    %cst_134 = arith.constant dense<0.000000e+00> : vector<8xf32>
    %449 = vector.multi_reduction <add>, %448, %cst_134 [1] : vector<8x32xf32> to vector<8xf32>
    %450 = vector.shape_cast %449 : vector<8xf32> to vector<8x1xf32>
    %cst_135 = arith.constant 3.200000e+01 : f32
    %451 = vector.broadcast %cst_135 : f32 to vector<8x1xf32>
    %452 = arith.divf %450, %451 : vector<8x1xf32>
    %453 = vector.broadcast %445 : vector<8x1xf32> to vector<8x32xf32>
    %454 = arith.subf %439, %453 : vector<8x32xf32>
    %cst_136 = arith.constant 9.99999974E-6 : f32
    %455 = vector.broadcast %cst_136 : f32 to vector<8x1xf32>
    %456 = arith.addf %452, %455 : vector<8x1xf32>
    %457 = math.rsqrt %456 : vector<8x1xf32>
    %458 = vector.broadcast %457 : vector<8x1xf32> to vector<8x32xf32>
    %459 = arith.mulf %454, %458 : vector<8x32xf32>
    %460 = vector.broadcast %440 : vector<1x32xf32> to vector<8x32xf32>
    %461 = arith.mulf %459, %460 : vector<8x32xf32>
    %462 = vector.broadcast %441 : vector<1x32xf32> to vector<8x32xf32>
    %463 = arith.addf %461, %462 : vector<8x32xf32>
    %c1_137 = arith.constant 1 : index
    %c0_138 = arith.constant 0 : index
    %c0_139 = arith.constant 0 : index
    %464 = vector.load %arg16[%c1_137, %c0_138, %c0_139] : memref<2x8x32xf32, #tpu.memory_space<vmem>>, vector<1x8x32xf32>
    %465 = vector.shape_cast %464 : vector<1x8x32xf32> to vector<8x32xf32>
    %466 = vector.shape_cast %463 : vector<8x32xf32> to vector<1x8x32xf32>
    tpu.vector_store %arg16[%c1_137, %c0_138, %c0_139], %466 {strides = array<i32>} : memref<2x8x32xf32, #tpu.memory_space<vmem>>, vector<1x8x32xf32>,
    return
  }
}

</mosaic_0001>

<bundles_post_ra>
// kernel: decoder_layer.1
= control target key start
LH: loop header
LB: loop body
LE: loop exit
PB: predicated region body
PF: predicated region fallthrough
CT: control target
= control target key end

     0   :  { %s5137_s0 = inlined_call_operand.vmem [shape: f32[2,8,32], index: 0, kind: input, shape index: {}]   ;;  %s5138_s1 = inlined_call_operand.vmem [shape: s32[2,8,1], index: 1, kind: input, shape index: {}]   ;;  %s5139_s2 = inlined_call_operand.vmem [shape: f32[32,96], index: 2, kind: input, shape index: {}]   ;;  %s5140_s3 = inlined_call_operand.vmem [shape: f32[1,96], index: 3, kind: input, shape index: {}]   ;;  %s5141_s4 = inlined_call_operand.vmem [shape: f32[1,32], index: 4, kind: input, shape index: {}]   ;;  %s5142_s5 = inlined_call_operand.vmem [shape: f32[1,32], index: 5, kind: input, shape index: {}]   ;;  %s5143_s6 = inlined_call_operand.vmem [shape: f32[32,96], index: 6, kind: input, shape index: {}]   ;;  %s5144_s7 = inlined_call_operand.vmem [shape: f32[1,96], index: 7, kind: input, shape index: {}]   ;;  %s5145_s8 = inlined_call_operand.vmem [shape: f32[1,32], index: 8, kind: input, shape index: {}]   ;;  %s5146_s9 = inlined_call_operand.vmem [shape: f32[1,32], index: 9, kind: input, shape index: {}]   ;;  %s5147_s10 = inlined_call_operand.vmem [shape: f32[32,64], index: 10, kind: input, shape index: {}]   ;;  %s5148_s11 = inlined_call_operand.vmem [shape: f32[1,64], index: 11, kind: input, shape index: {}]   ;;  %s5149_s12 = inlined_call_operand.vmem [shape: f32[64,32], index: 12, kind: input, shape index: {}]   ;;  %s5150_s13 = inlined_call_operand.vmem [shape: f32[1,32], index: 13, kind: input, shape index: {}]   ;;  %s5151_s14 = inlined_call_operand.vmem [shape: f32[1,32], index: 14, kind: input, shape index: {}]   ;;  %s5152_s15 = inlined_call_operand.vmem [shape: f32[1,32], index: 15, kind: input, shape index: {}]   ;;  %s5153_s16 = inlined_call_operand.hbm [shape: f32[2,8,32], index: 16, kind: output, shape index: {}]  }
   0x1   :  { %5155 = sst [smem:[#allocation5_spill]] %s5137_s0 }
   0x2   :  { %v68_v0 = vld [vmem:[%s5139_s2] sm:$0xff]  ;;  %v69_v1 = vld [vmem:[%s5139_s2 + $0x8] sm:$0xff]  ;;  %v70_v2 = vld [vmem:[%s5139_s2 + $0x10] sm:$0xff]  ;;  %v4391_v3 = vmov 0.0|0.0   ;;  %vm4392_vm0 = vmmov 0   ;;  %v4393_v6 = vmov 0.0  }
   0x3   :  { %4216 = vmatprep.subr.bf16.mxu0 %v4391_v3  ;;  %v4500_v4 = vpack.c.bf16 %v69_v1, %v68_v0  ;;  %v71_v5 = vld [vmem:[%s5139_s2 + $0x18] sm:$0xff]  ;;  %3960 = vmatprep.mubr.msk.f32.mxu0 %vm4392_vm0, %v4393_v6 }
   0x4   :  { %3968 = vmatprep.subr.mxu1 %v4393_v6  ;;  %3970 = vmatprep.mubr.msk.f32.mxu1 %vm4392_vm0, %v4393_v6 }
   0x5   :  { %21 = vsyncpa [#allocation3], 0  ;;  %4218 = vmatpush3.bf16.msra.mxu0 %v4500_v4  ;;  %v4511_v7 = vpack.c.bf16 %v71_v5, %v70_v2  ;;  %s5156_s30 = sld [smem:[#allocation5_spill]]  ;;  %vm81_vm1 = vcmask 261120   ;;  %v4528_v9 = vld [vmem:[%s5140_s3] ss:$0 sm:$0xff]  ;;  %v54_v27 = vlaneseq }
   0x6   :  { %4219 = vmatprep.subr.bf16.mxu0 %v4391_v3  ;;  %v4394_v10 = vmov 0   ;;  %s4395_s18 = smov 104   ;;  %s4396_s19 = smov 120   ;;  %vm172_vm2 = vcmask 64512   ;;  %v60_v19 = vld [vmem:[%s5138_s1] sm:$0xff]  ;;  %vm854_vm7 = vcmask 130048  }
   0x7   :  { %4290 = vset.pattern.permute.xlu0 %v4394_v10  ;;  %s4397_s20 = smov 96   ;;  %s4398_s3 = smov 112   ;;  %vm61_vm3 = vcmp.gt.s32.totalorder %v60_v19, 0  ;;  %v4582_v28 = vshrl.u32 %v54_v27, 7  ;;  %v4584_v29 = vand.u32 127, %v54_v27  ;;  %vm856_vm8 = vcmask 195584  }
   0x8   :  { %v62_v20 = vsel %vm61_vm3, 1, %v4394_v10  ;;  %s4399_s23 = smov 64   ;;  %s4400_s24 = smov 8   ;;  %vm1799_vm9 = vcmask 523264  }
   0x9   :  { %4221 = vmatpush3.bf16.msra.mxu0 %v4511_v7  ;;  %vm58_vm4 = vcmp.gt.s32.totalorder %v4584_v29, %v4582_v28  ;;  %s4401_s25 = smov 24   ;;  %s4402_s26 = smov 16  }
   0xa   :  { %3963 = vmatprep.subr.mxu0 %v4393_v6 }
   0xb   :  { %v4518_v8 = vld [vmem:[%s5156_s30] sm:$0xff] }
   0xc   :  { %3961 = vmatmul.mubr.msk.f32.vlgmr.msra.gmra.mrb[0].mxu0 %vm81_vm1, %v4518_v8 }
   0xd   :  { %3965 = vmatprep.mubr.msk.f32.mxu0 %vm4392_vm0, %v4393_v6 }
  0xdf   :  { %v151_v11 = vpop.f32.mrb[0].mxu0 }
  0xe0   :  { %v4532_v12 = vadd.f32 %v4528_v9, %v151_v11  ;;  %v3962_v13 = vpop.f32.mrb[1].mxu0 }
  0xe2   :  { %168 = vrot.lane.b32.xlu1 %v4532_v12, %s4395_s18  ;;  %164 = vrot.lane.b32.xlu0 %v4532_v12, %s4396_s19  ;;  %v155_v14 = vmul.f32 0.5, %v4532_v12 }
  0xe6   :  { %170 = vrot.lane.b32.xlu1 %v4532_v12, %s4397_s20  ;;  %166 = vrot.lane.b32.xlu0 %v4532_v12, %s4398_s3 }
  0xea   :  { %157 = vrot.lane.b32.xlu1 %v155_v14, %s4396_s19 }
 0x154   :  { %v4544_v15 = vpop.permute.xlu1 %168  ;;  %v4546_v16 = vpop.permute.xlu0 %164 }
 0x155   :  { %247 = vrot.lane.b32.xlu0 %v4546_v16, %s4397_s20  ;;  %399 = vrot.lane.b32.xlu1 %v4544_v15, %s4397_s20 }
 0x158   :  { %v171_v17 = vpop.permute.xlu1 %170  ;;  %v4552_v18 = vpop.permute.xlu0 %166 }
 0x159   :  { %3964 = vmatpush3.xpose.msk.msra.mxu0 %vm172_vm2, %v171_v17  ;;  %323 = vrot.lane.b32.xlu0 %v4552_v18, %s4397_s20 }
 0x15a   :  { %161 = vrot.lane.b32.xlu1 %v155_v14, %s4395_s18  ;;  %3973 = vmatprep.subr.mxu0 %v4393_v6 }
 0x15c   :  { %3966 = vmatmul.mubr.msk.f32.vlgmr.msra.gmra.mrb[2].mxu0 %vm172_vm2, %v155_v14  ;;  %v158_v21 = vpop.permute.xlu1 %157 }
 0x15d   :  { %159 = vrot.lane.b32.xlu0 %v155_v14, %s4398_s3  ;;  %3975 = vmatprep.mubr.msk.f32.mxu0 %vm4392_vm0, %v4393_v6 }
 0x161   :  { %64 = vperm.xlu0 %4290, %v62_v20  }
 0x1c7   :  { %v248_v22 = vpop.permute.xlu0 %247  ;;  %v400_v23 = vpop.permute.xlu1 %399 }
 0x1c8   :  { %3969 = vmatpush3.xpose.msk.msra.mxu1 %vm172_vm2, %v248_v22 }
 0x1c9   :  { %3978 = vmatprep.subr.mxu1 %v4393_v6 }
 0x1cb   :  { %v324_v24 = vpop.permute.xlu0 %323  ;;  %3971 = vmatmul.mubr.msk.f32.vlgmr.msra.gmra.mrb[0].mxu1 %vm172_vm2, %v158_v21 }
 0x1cc   :  { %3974 = vmatpush3.xpose.msk.msra.mxu0 %vm172_vm2, %v324_v24  ;;  %3979 = vmatpush3.xpose.msk.msra.mxu1 %vm172_vm2, %v400_v23  ;;  %v162_v25 = vpop.permute.xlu1 %161 }
 0x1cd   :  { %3980 = vmatprep.mubr.msk.f32.mxu1 %vm4392_vm0, %v4393_v6  ;;  %3983 = vmatprep.subr.mxu0 %v4393_v6 }
 0x1ce   :  { %3988 = vmatprep.subr.mxu1 %v4393_v6 }
 0x1cf   :  { %v160_v26 = vpop.permute.xlu0 %159  ;;  %3981 = vmatmul.mubr.msk.f32.vlgmr.msra.gmra.mrb[2].mxu1 %vm172_vm2, %v162_v25 }
 0x1d0   :  { %3976 = vmatmul.mubr.msk.f32.vlgmr.msra.gmra.mrb[4].mxu0 %vm172_vm2, %v160_v26  ;;  %3990 = vmatprep.mubr.msk.f32.mxu1 %vm4392_vm0, %v4393_v6 }
 0x1d1   :  { %3985 = vmatprep.mubr.msk.f32.mxu0 %vm4392_vm0, %v4393_v6 }
 0x1e0   :  { %v65_v30 = vpop.permute.xlu0 %64 }
 0x1e1   :  { %vm66_vm5 = vcmp.eq.s32.totalorder %v65_v30, 1 }
 0x1e2   :  { %vm4591_vm6 = vmor %vm66_vm5, %vm58_vm4 }
 0x22f   :  { %v243_v32 = vpop.f32.mrb[2].mxu0 }
 0x230   :  { %v477_v33 = vsel %vm4591_vm6, 1e-09, %v243_v32  ;;  %v3967_v34 = vpop.f32.mrb[3].mxu0 }
 0x231   :  { %v481_v35 = vsel %vm172_vm2, %v477_v33, -inf }
 0x232   :  { %482 = vmax.xlane.f32.xlu1 %v481_v35 }
 0x29e   :  { %v319_v36 = vpop.f32.mrb[0].mxu1 }
 0x29f   :  { %v478_v37 = vsel %vm4591_vm6, 1e-09, %v319_v36  ;;  %v3972_v38 = vpop.f32.mrb[1].mxu1 }
 0x2a0   :  { %v484_v39 = vsel %vm172_vm2, %v478_v37, -inf }
 0x2a1   :  { %485 = vmax.xlane.f32.xlu0 %v484_v39 }
 0x2a2   :  { %v471_v40 = vpop.f32.mrb[2].mxu1 }
 0x2a3   :  { %v480_v41 = vsel %vm4591_vm6, 1e-09, %v471_v40  ;;  %v395_v42 = vpop.f32.mrb[4].mxu0  ;;  %v3982_v43 = vpop.f32.mrb[3].mxu1 }
 0x2a4   :  { %v479_v44 = vsel %vm4591_vm6, 1e-09, %v395_v42  ;;  %v3977_v45 = vpop.f32.mrb[5].mxu0  ;;  %v490_v46 = vsel %vm172_vm2, %v480_v41, -inf }
 0x2a5   :  { %491 = vmax.xlane.f32.xlu0 %v490_v46  ;;  %v487_v47 = vsel %vm172_vm2, %v479_v44, -inf }
 0x2a6   :  { %488 = vmax.xlane.f32.xlu1 %v487_v47 }
 0x2b7   :  { %537 = vrot.lane.b32.xlu1 %v4532_v12, %s4399_s23 }
 0x2bf   :  { %v483_v48 = vpop.xlane.xlu1 %482 }
 0x2c0   :  { %v493_v49 = vsub.f32 %v477_v33, %v483_v48 }
 0x2c2   :  { %v497_v50 = vmul.f32 1.442695, %v493_v49 }
 0x2c4   :  { %4291 = vpow2.f32 %v497_v50 }
 0x2ce   :  { %v4292_v51 = vpop.eup %4291 }
 0x2cf   :  { %v505_v52 = vsel %vm172_vm2, %v4292_v51, 0.0 }
 0x2db   :  { %506 = vadd.xlane.f32.xlu1 %v505_v52 }
 0x32e   :  { %v486_v53 = vpop.xlane.xlu0 %485 }
 0x32f   :  { %v494_v54 = vsub.f32 %v478_v37, %v486_v53 }
 0x331   :  { %v499_v55 = vmul.f32 1.442695, %v494_v54 }
 0x332   :  { %v492_v56 = vpop.xlane.xlu0 %491 }
 0x333   :  { %4293 = vpow2.f32 %v499_v55  ;;  %v496_v57 = vsub.f32 %v480_v41, %v492_v56  ;;  %v489_v58 = vpop.xlane.xlu1 %488 }
 0x334   :  { %v495_v59 = vsub.f32 %v479_v44, %v489_v58 }
 0x335   :  { %v503_v60 = vmul.f32 1.442695, %v496_v57 }
 0x336   :  { %v501_v61 = vmul.f32 1.442695, %v495_v59 }
 0x337   :  { %4295 = vpow2.f32 %v503_v60  ;;  %v538_v62 = vpop.permute.xlu1 %537 }
 0x338   :  { %4297 = vpow2.f32 %v501_v61  ;;  %3984 = vmatpush3.msra.mxu0 %v538_v62 }
 0x339   :  { %3993 = vmatprep.subr.mxu0 %v4393_v6 }
 0x33d   :  { %v4294_v63 = vpop.eup %4293 }
 0x33e   :  { %v508_v0 = vsel %vm172_vm2, %v4294_v63, 0.0 }
 0x33f   :  { %509 = vadd.xlane.f32.xlu0 %v508_v0  ;;  %v888_v0 = vld [vmem:[%s5143_s6 + $0x8] sm:$0xff] }
 0x341   :  { %v4296_v1 = vpop.eup %4295 }
 0x342   :  { %v4298_v2 = vpop.eup %4297  ;;  %v514_v5 = vsel %vm172_vm2, %v4296_v1, 0.0 }
 0x343   :  { %515 = vadd.xlane.f32.xlu0 %v514_v5  ;;  %v511_v11 = vsel %vm172_vm2, %v4298_v2, 0.0 }
 0x344   :  { %512 = vadd.xlane.f32.xlu1 %v511_v11 }
 0x355   :  { %689 = vrot.lane.b32.xlu1 %v4552_v18, %s4399_s23 }
 0x359   :  { %613 = vrot.lane.b32.xlu0 %v4546_v16, %s4399_s23  ;;  %765 = vrot.lane.b32.xlu1 %v4544_v15, %s4399_s23 }
 0x368   :  { %v507_v12 = vpop.xlane.xlu1 %506 }
 0x369   :  { %4299 = vrcp.f32 %v507_v12 }
 0x373   :  { %v4300_v13 = vpop.eup %4299 }
 0x374   :  { %v521_v14 = vmul.f32 %v4300_v13, %v507_v12 }
 0x376   :  { %v525_v17 = vsub.f32 2.0, %v521_v14 }
 0x378   :  { %v529_v19 = vmul.f32 %v4300_v13, %v525_v17  ;;  %v4667_v17 = vld [vmem:[%s5141_s4] ss:$0 sm:$0xff] }
 0x37a   :  { %v533_v20 = vmul.f32 %v4292_v51, %v529_v19 }
 0x37c   :  { %3986 = vmatmul.mubr.msk.f32.vlgmr.msra.gmra.mrb[6].mxu0 %vm172_vm2, %v533_v20  ;;  %v4672_v20 = vld [vmem:[%s5142_s5] ss:$0 sm:$0xff] }
 0x37d   :  { %3995 = vmatprep.mubr.msk.f32.mxu0 %vm4392_vm0, %v4393_v6 }
 0x3cc   :  { %v510_v21 = vpop.xlane.xlu0 %509 }
 0x3cd   :  { %4301 = vrcp.f32 %v510_v21 }
 0x3d0   :  { %v516_v18 = vpop.xlane.xlu0 %515 }
 0x3d1   :  { %4303 = vrcp.f32 %v516_v18  ;;  %v513_v16 = vpop.xlane.xlu1 %512 }
 0x3d2   :  { %4305 = vrcp.f32 %v513_v16 }
 0x3d4   :  { %v614_v22 = vpop.permute.xlu0 %613 }
 0x3d5   :  { %3989 = vmatpush3.msra.mxu1 %v614_v22  ;;  %v690_v15 = vpop.permute.xlu1 %689 }
 0x3d6   :  { %3994 = vmatpush3.msra.mxu0 %v690_v15  ;;  %3998 = vmatprep.subr.mxu1 %v4393_v6 }
 0x3d7   :  { %v4302_v23 = vpop.eup %4301  ;;  %4222 = vmatprep.subr.bf16.mxu0 %v4391_v3 }
 0x3d8   :  { %v522_v24 = vmul.f32 %v4302_v23, %v510_v21 }
 0x3d9   :  { %v766_v38 = vpop.permute.xlu1 %765 }
 0x3da   :  { %v526_v25 = vsub.f32 2.0, %v522_v24 }
 0x3db   :  { %v4304_v26 = vpop.eup %4303 }
 0x3dc   :  { %v4306_v27 = vpop.eup %4305  ;;  %v530_v30 = vmul.f32 %v4302_v23, %v526_v25  ;;  %v524_v32 = vmul.f32 %v4304_v26, %v516_v18 }
 0x3dd   :  { %v523_v33 = vmul.f32 %v4306_v27, %v513_v16  ;;  %v4685_v16 = vld [vmem:[%s5144_s7] ss:$0 sm:$0xff] }
 0x3de   :  { %v534_v34 = vmul.f32 %v4294_v63, %v530_v30  ;;  %v528_v35 = vsub.f32 2.0, %v524_v32  ;;  %v887_v63 = vld [vmem:[%s5143_s6] sm:$0xff] }
 0x3df   :  { %v527_v36 = vsub.f32 2.0, %v523_v33 }
 0x3e0   :  { %v532_v37 = vmul.f32 %v4304_v26, %v528_v35  ;;  %3991 = vmatmul.mubr.msk.f32.vlgmr.msra.gmra.mrb[4].mxu1 %vm172_vm2, %v534_v34 }
 0x3e1   :  { %v531_v39 = vmul.f32 %v4306_v27, %v527_v36  ;;  %3999 = vmatpush3.msra.mxu1 %v766_v38  ;;  %4000 = vmatprep.mubr.msk.f32.mxu1 %vm4392_vm0, %v4393_v6 }
 0x3e2   :  { %v536_v40 = vmul.f32 %v4296_v1, %v532_v37  ;;  %4014 = vmatprep.subr.mxu1 %v4393_v6  ;;  %v4650_v1 = vpack.c.bf16 %v888_v0, %v887_v63 }
 0x3e3   :  { %v535_v41 = vmul.f32 %v4298_v2, %v531_v39  ;;  %v890_v2 = vld [vmem:[%s5143_s6 + $0x18] sm:$0xff] }
 0x3e4   :  { %4001 = vmatmul.mubr.msk.f32.vlgmr.msra.gmra.mrb[6].mxu1 %vm172_vm2, %v536_v40 }
 0x3e5   :  { %3996 = vmatmul.mubr.msk.f32.vlgmr.msra.gmra.mrb[8].mxu0 %vm172_vm2, %v535_v41  ;;  %4016 = vmatprep.mubr.msk.f32.mxu1 %vm4392_vm0, %v4393_v6 }
 0x3e6   :  { %4011 = vmatprep.mubr.msk.f32.mxu0 %vm4392_vm0, %v4393_v6  ;;  %4224 = vmatpush3.bf16.msra.mxu0 %v4650_v1 }
 0x3e7   :  { %4225 = vmatprep.subr.bf16.mxu0 %v4391_v3 }
 0x44f   :  { %v609_v42 = vpop.f32.mrb[6].mxu0 }
 0x450   :  { %v3987_v43 = vpop.f32.mrb[7].mxu0 }
 0x4b3   :  { %v685_v44 = vpop.f32.mrb[4].mxu1 }
 0x4b4   :  { %842 = vrot.lane.b32.xlu0 %v685_v44, %s4400_s24  ;;  %v3992_v45 = vpop.f32.mrb[5].mxu1 }
 0x4b7   :  { %v837_v46 = vpop.f32.mrb[6].mxu1 }
 0x4b8   :  { %v761_v47 = vpop.f32.mrb[8].mxu0  ;;  %850 = vrot.lane.b32.xlu0 %v837_v46, %s4401_s25  ;;  %v4002_v48 = vpop.f32.mrb[7].mxu1 }
 0x4b9   :  { %846 = vrot.lane.b32.xlu1 %v761_v47, %s4402_s26  ;;  %v3997_v49 = vpop.f32.mrb[9].mxu0 }
 0x526   :  { %v843_v50 = vpop.permute.xlu0 %842 }
 0x527   :  { %v853_v51 = vsel %vm172_vm2, %v609_v42, %v843_v50 }
 0x52a   :  { %v851_v53 = vpop.permute.xlu0 %850 }
 0x52b   :  { %v847_v52 = vpop.permute.xlu1 %846 }
 0x52c   :  { %v855_v54 = vsel %vm854_vm7, %v853_v51, %v847_v52 }
 0x52d   :  { %v857_v55 = vsel %vm856_vm8, %v855_v54, %v851_v53 }
 0x52e   :  { %v858_v56 = vadd.f32 %v857_v55, %v4518_v8  ;;  %v889_v8 = vld [vmem:[%s5143_s6 + $0x10] sm:$0xff] }
 0x52f   :  { %v4660_v5 = vpack.c.bf16 %v890_v2, %v889_v8 }
 0x530   :  { %v859_v57 = vsel %vm81_vm1, %v858_v56, 0.0 }
 0x531   :  { %860 = vadd.xlane.f32.xlu1 %v859_v57  ;;  %4227 = vmatpush3.bf16.msra.mxu0 %v4660_v5 }
 0x532   :  { %4024 = vmatprep.subr.mxu0 %v4393_v6 }
 0x5be   :  { %v861_v58 = vpop.xlane.xlu1 %860 }
 0x5bf   :  { %v863_v59 = vmul.f32 0.03125, %v861_v58 }
 0x5c1   :  { %v864_v60 = vsub.f32 %v858_v56, %v863_v59 }
 0x5c3   :  { %v865_v61 = vmul.f32 %v864_v60, %v864_v60 }
 0x5c5   :  { %v866_v62 = vsel %vm81_vm1, %v865_v61, 0.0 }
 0x5c6   :  { %867 = vadd.xlane.f32.xlu0 %v866_v62 }
 0x653   :  { %v868_v11 = vpop.xlane.xlu0 %867 }
 0x654   :  { %v869_v12 = vmul.f32 0.03125, %v868_v11 }
 0x656   :  { %v870_v13 = vadd.f32 1e-05, %v869_v12 }
 0x658   :  { %4307 = vrsqrt.f32 %v870_v13 }
 0x662   :  { %v4308_v14 = vpop.eup %4307 }
 0x663   :  { %v872_v19 = vmul.f32 %v4308_v14, %v864_v60 }
 0x665   :  { %v879_v21 = vmul.f32 %v4667_v17, %v872_v19 }
 0x667   :  { %v4676_v18 = vadd.f32 %v4672_v20, %v879_v21 }
 0x669   :  { %4012 = vmatmul.mubr.msk.f32.vlgmr.msra.gmra.mrb[10].mxu0 %vm81_vm1, %v4676_v18 }
 0x66a   :  { %4026 = vmatprep.mubr.msk.f32.mxu0 %vm4392_vm0, %v4393_v6 }
 0x73c   :  { %v969_v22 = vpop.f32.mrb[10].mxu0 }
 0x73d   :  { %v4688_v15 = vadd.f32 %v4685_v16, %v969_v22  ;;  %v4013_v23 = vpop.f32.mrb[11].mxu0 }
 0x73f   :  { %984 = vrot.lane.b32.xlu1 %v4688_v15, %s4398_s3  ;;  %982 = vrot.lane.b32.xlu0 %v4688_v15, %s4396_s19  ;;  %v973_v24 = vmul.f32 0.5, %v4688_v15 }
 0x743   :  { %986 = vrot.lane.b32.xlu1 %v4688_v15, %s4395_s18  ;;  %988 = vrot.lane.b32.xlu0 %v4688_v15, %s4397_s20 }
 0x747   :  { %975 = vrot.lane.b32.xlu0 %v973_v24, %s4396_s19 }
 0x7b1   :  { %v4700_v25 = vpop.permute.xlu1 %984  ;;  %v4702_v26 = vpop.permute.xlu0 %982 }
 0x7b2   :  { %1064 = vrot.lane.b32.xlu1 %v4702_v26, %s4397_s20 }
 0x7b5   :  { %v4706_v27 = vpop.permute.xlu1 %986  ;;  %v989_v30 = vpop.permute.xlu0 %988 }
 0x7b6   :  { %1140 = vrot.lane.b32.xlu1 %v4700_v25, %s4397_s20  ;;  %4015 = vmatpush3.xpose.msk.msra.mxu1 %vm172_vm2, %v989_v30 }
 0x7b7   :  { %1216 = vrot.lane.b32.xlu0 %v4706_v27, %s4397_s20  ;;  %4019 = vmatprep.subr.mxu1 %v4393_v6 }
 0x7b9   :  { %4017 = vmatmul.mubr.msk.f32.vlgmr.msra.gmra.mrb[8].mxu1 %vm172_vm2, %v973_v24  ;;  %v976_v33 = vpop.permute.xlu0 %975 }
 0x7ba   :  { %977 = vrot.lane.b32.xlu1 %v973_v24, %s4398_s3  ;;  %4021 = vmatprep.mubr.msk.f32.mxu1 %vm4392_vm0, %v4393_v6 }
 0x7bb   :  { %979 = vrot.lane.b32.xlu0 %v973_v24, %s4395_s18 }
 0x824   :  { %v1065_v32 = vpop.permute.xlu1 %1064 }
 0x825   :  { %4020 = vmatpush3.xpose.msk.msra.mxu1 %vm172_vm2, %v1065_v32 }
 0x826   :  { %4029 = vmatprep.subr.mxu1 %v4393_v6 }
 0x828   :  { %v1141_v34 = vpop.permute.xlu1 %1140  ;;  %4022 = vmatmul.mubr.msk.f32.vlgmr.msra.gmra.mrb[10].mxu1 %vm172_vm2, %v976_v33 }
 0x829   :  { %v1217_v35 = vpop.permute.xlu0 %1216  ;;  %4025 = vmatpush3.xpose.msk.msra.mxu0 %vm172_vm2, %v1141_v34  ;;  %4031 = vmatprep.mubr.msk.f32.mxu1 %vm4392_vm0, %v4393_v6 }
 0x82a   :  { %4030 = vmatpush3.xpose.msk.msra.mxu1 %vm172_vm2, %v1217_v35  ;;  %4034 = vmatprep.subr.mxu0 %v4393_v6 }
 0x82b   :  { %4039 = vmatprep.subr.mxu1 %v4393_v6 }
 0x82c   :  { %v978_v36 = vpop.permute.xlu1 %977 }
 0x82d   :  { %v980_v37 = vpop.permute.xlu0 %979  ;;  %4027 = vmatmul.mubr.msk.f32.vlgmr.msra.gmra.mrb[12].mxu0 %vm172_vm2, %v978_v36 }
 0x82e   :  { %4032 = vmatmul.mubr.msk.f32.vlgmr.msra.gmra.mrb[12].mxu1 %vm172_vm2, %v980_v37  ;;  %4036 = vmatprep.mubr.msk.f32.mxu0 %vm4392_vm0, %v4393_v6 }
 0x82f   :  { %4041 = vmatprep.mubr.msk.f32.mxu1 %vm4392_vm0, %v4393_v6 }
 0x88c   :  { %v1060_v38 = vpop.f32.mrb[8].mxu1 }
 0x88d   :  { %v1292_v39 = vsel %vm4591_vm6, 1e-09, %v1060_v38  ;;  %v4018_v40 = vpop.f32.mrb[9].mxu1 }
 0x88e   :  { %v1296_v41 = vsel %vm172_vm2, %v1292_v39, -inf }
 0x88f   :  { %1297 = vmax.xlane.f32.xlu1 %v1296_v41 }
 0x8fb   :  { %v1136_v42 = vpop.f32.mrb[10].mxu1 }
 0x8fc   :  { %v1293_v43 = vsel %vm4591_vm6, 1e-09, %v1136_v42  ;;  %v4023_v44 = vpop.f32.mrb[11].mxu1 }
 0x8fd   :  { %v1299_v45 = vsel %vm172_vm2, %v1293_v43, -inf }
 0x8fe   :  { %1300 = vmax.xlane.f32.xlu0 %v1299_v45 }
 0x900   :  { %v1212_v46 = vpop.f32.mrb[12].mxu0 }
 0x901   :  { %v1294_v47 = vsel %vm4591_vm6, 1e-09, %v1212_v46  ;;  %v1288_v48 = vpop.f32.mrb[12].mxu1  ;;  %v4028_v49 = vpop.f32.mrb[13].mxu0 }
 0x902   :  { %v1295_v50 = vsel %vm4591_vm6, 1e-09, %v1288_v48  ;;  %v4033_v51 = vpop.f32.mrb[13].mxu1  ;;  %v1302_v52 = vsel %vm172_vm2, %v1294_v47, -inf }
 0x903   :  { %v1305_v53 = vsel %vm172_vm2, %v1295_v50, -inf  ;;  %1303 = vmax.xlane.f32.xlu0 %v1302_v52 }
 0x904   :  { %1306 = vmax.xlane.f32.xlu1 %v1305_v53 }
 0x91c   :  { %v1298_v54 = vpop.xlane.xlu1 %1297 }
 0x91d   :  { %v1308_v55 = vsub.f32 %v1292_v39, %v1298_v54 }
 0x91f   :  { %v1312_v56 = vmul.f32 1.442695, %v1308_v55 }
 0x921   :  { %4309 = vpow2.f32 %v1312_v56 }
 0x92b   :  { %v4310_v57 = vpop.eup %4309 }
 0x92c   :  { %v1320_v58 = vsel %vm172_vm2, %v4310_v57, 0.0 }
 0x92d   :  { %1321 = vadd.xlane.f32.xlu0 %v1320_v58 }
 0x98b   :  { %v1301_v59 = vpop.xlane.xlu0 %1300 }
 0x98c   :  { %v1309_v60 = vsub.f32 %v1293_v43, %v1301_v59 }
 0x98e   :  { %v1314_v61 = vmul.f32 1.442695, %v1309_v60 }
 0x990   :  { %4311 = vpow2.f32 %v1314_v61  ;;  %v1304_v31 = vpop.xlane.xlu0 %1303 }
 0x991   :  { %v1310_v62 = vsub.f32 %v1294_v47, %v1304_v31  ;;  %v1307_v12 = vpop.xlane.xlu1 %1306 }
 0x992   :  { %v1311_v13 = vsub.f32 %v1295_v50, %v1307_v12 }
 0x993   :  { %v1316_v63 = vmul.f32 1.442695, %v1310_v62 }
 0x994   :  { %v1318_v14 = vmul.f32 1.442695, %v1311_v13 }
 0x995   :  { %4313 = vpow2.f32 %v1316_v63 }
 0x996   :  { %4315 = vpow2.f32 %v1318_v14 }
 0x99a   :  { %v4312_v0 = vpop.eup %4311 }
 0x99b   :  { %v1323_v8 = vsel %vm172_vm2, %v4312_v0, 0.0 }
 0x99c   :  { %1324 = vadd.xlane.f32.xlu1 %v1323_v8 }
 0x99f   :  { %v4314_v2 = vpop.eup %4313 }
 0x9a0   :  { %v1326_v11 = vsel %vm172_vm2, %v4314_v2, 0.0  ;;  %v4316_v19 = vpop.eup %4315 }
 0x9a1   :  { %1327 = vadd.xlane.f32.xlu0 %v1326_v11  ;;  %v1329_v21 = vsel %vm172_vm2, %v4316_v19, 0.0 }
 0x9ad   :  { %1428 = vrot.lane.b32.xlu1 %v4702_v26, %s4399_s23 }
 0x9b7   :  { %1352 = vrot.lane.b32.xlu0 %v4688_v15, %s4399_s23 }
 0x9ba   :  { %v1322_v22 = vpop.xlane.xlu0 %1321 }
 0x9bb   :  { %1580 = vrot.lane.b32.xlu0 %v4706_v27, %s4399_s23  ;;  %4317 = vrcp.f32 %v1322_v22 }
 0x9c5   :  { %v4318_v23 = vpop.eup %4317 }
 0x9c6   :  { %v1336_v24 = vmul.f32 %v4318_v23, %v1322_v22  ;;  %v1700_v22 = vld [vmem:[%s5147_s10 + $0x8] sm:$0xff] }
 0x9c8   :  { %v1340_v15 = vsub.f32 2.0, %v1336_v24  ;;  %v1702_v24 = vld [vmem:[%s5147_s10 + $0x18] sm:$0xff] }
 0x9ca   :  { %v1344_v32 = vmul.f32 %v4318_v23, %v1340_v15  ;;  %v1784_v15 = vld [vmem:[%s5149_s12] sm:$0xff] }
 0x9cc   :  { %v1348_v33 = vmul.f32 %v4310_v57, %v1344_v32  ;;  %v1786_v32 = vld [vmem:[%s5149_s12 + $0x10] sm:$0xff] }
 0x9d1   :  { %1330 = vadd.xlane.f32.xlu1 %v1329_v21  ;;  %v1699_v21 = vld [vmem:[%s5147_s10] sm:$0xff] }
 0x9d2   :  { %v4789_v23 = vpack.c.bf16 %v1700_v22, %v1699_v21 }
 0x9e2   :  { %1504 = vrot.lane.b32.xlu1 %v4700_v25, %s4399_s23 }
 0xa29   :  { %v1325_v26 = vpop.xlane.xlu1 %1324 }
 0xa2a   :  { %4319 = vrcp.f32 %v1325_v26 }
 0xa2d   :  { %v1429_v30 = vpop.permute.xlu1 %1428 }
 0xa2e   :  { %4040 = vmatpush3.msra.mxu1 %v1429_v30  ;;  %v1328_v27 = vpop.xlane.xlu0 %1327  ;;  %v1785_v30 = vld [vmem:[%s5149_s12 + $0x8] sm:$0xff] }
 0xa2f   :  { %4049 = vmatprep.subr.mxu1 %v4393_v6  ;;  %4321 = vrcp.f32 %v1328_v27 }
 0xa32   :  { %v1353_v34 = vpop.permute.xlu0 %1352 }
 0xa33   :  { %4035 = vmatpush3.msra.mxu0 %v1353_v34 }
 0xa34   :  { %v4320_v35 = vpop.eup %4319  ;;  %4037 = vmatmul.mubr.msk.f32.vlgmr.msra.gmra.mrb[14].mxu0 %vm172_vm2, %v1348_v33  ;;  %4044 = vmatprep.subr.mxu0 %v4393_v6  ;;  %v1787_v33 = vld [vmem:[%s5149_s12 + $0x18] sm:$0xff] }
 0xa35   :  { %v1337_v25 = vmul.f32 %v4320_v35, %v1325_v26  ;;  %4046 = vmatprep.mubr.msk.f32.mxu0 %vm4392_vm0, %v4393_v6  ;;  %v4818_v34 = vpack.c.bf16 %v1787_v33, %v1786_v32 }
 0xa36   :  { %v1581_v39 = vpop.permute.xlu0 %1580 }
 0xa37   :  { %v1341_v36 = vsub.f32 2.0, %v1337_v25  ;;  %v1789_v25 = vld [vmem:[%s5149_s12 + $0x28] sm:$0xff] }
 0xa39   :  { %v1345_v37 = vmul.f32 %v4320_v35, %v1341_v36  ;;  %v4322_v40 = vpop.eup %4321  ;;  %v1788_v35 = vld [vmem:[%s5149_s12 + $0x20] sm:$0xff] }
 0xa3a   :  { %v1338_v41 = vmul.f32 %v4322_v40, %v1328_v27  ;;  %v4812_v27 = vpack.c.bf16 %v1785_v30, %v1784_v15  ;;  %v4828_v36 = vpack.c.bf16 %v1789_v25, %v1788_v35 }
 0xa3b   :  { %v1349_v38 = vmul.f32 %v4312_v0, %v1345_v37 }
 0xa3c   :  { %v1342_v42 = vsub.f32 2.0, %v1338_v41  ;;  %v4836_v41 = vld [vmem:[%s5145_s8] ss:$0 sm:$0xff] }
 0xa3d   :  { %4042 = vmatmul.mubr.msk.f32.vlgmr.msra.gmra.mrb[14].mxu1 %vm172_vm2, %v1349_v38 }
 0xa3e   :  { %4050 = vmatpush3.msra.mxu1 %v1581_v39  ;;  %4051 = vmatprep.mubr.msk.f32.mxu1 %vm4392_vm0, %v4393_v6  ;;  %v1346_v43 = vmul.f32 %v4322_v40, %v1342_v42 }
 0xa3f   :  { %4234 = vmatprep.subr.bf16.mxu1 %v4391_v3 }
 0xa40   :  { %v1350_v45 = vmul.f32 %v4314_v2, %v1346_v43  ;;  %v4841_v43 = vld [vmem:[%s5146_s9] ss:$0 sm:$0xff] }
 0xa5e   :  { %v1331_v44 = vpop.xlane.xlu1 %1330 }
 0xa5f   :  { %4323 = vrcp.f32 %v1331_v44 }
 0xa62   :  { %v1505_v46 = vpop.permute.xlu1 %1504 }
 0xa63   :  { %4045 = vmatpush3.msra.mxu0 %v1505_v46  ;;  %v4857_v46 = vld [vmem:[%s5156_s30 + $0x8] sm:$0xff] }
 0xa64   :  { %4047 = vmatmul.mubr.msk.f32.vlgmr.msra.gmra.mrb[16].mxu0 %vm172_vm2, %v1350_v45  ;;  %4228 = vmatprep.subr.bf16.mxu0 %v4391_v3 }
 0xa65   :  { %4062 = vmatprep.mubr.msk.f32.mxu0 %vm4392_vm0, %v4393_v6  ;;  %4230 = vmatpush3.bf16.msra.mxu0 %v4789_v23 }
 0xa66   :  { %4231 = vmatprep.subr.bf16.mxu0 %v4391_v3 }
 0xa69   :  { %v4324_v47 = vpop.eup %4323 }
 0xa6a   :  { %v1339_v48 = vmul.f32 %v4324_v47, %v1331_v44 }
 0xa6c   :  { %v1343_v49 = vsub.f32 2.0, %v1339_v48  ;;  %v4877_v48 = vld [vmem:[%s5148_s11] ss:$0 sm:$0xff] }
 0xa6e   :  { %v1347_v50 = vmul.f32 %v4324_v47, %v1343_v49 }
 0xa70   :  { %v1351_v51 = vmul.f32 %v4316_v19, %v1347_v50 }
 0xa72   :  { %4052 = vmatmul.mubr.msk.f32.vlgmr.msra.gmra.mrb[16].mxu1 %vm172_vm2, %v1351_v51 }
 0xa73   :  { %4081 = vmatprep.mubr.msk.f32.mxu1 %vm4392_vm0, %v4393_v6  ;;  %4236 = vmatpush3.bf16.msra.mxu1 %v4812_v27 }
 0xa74   :  { %4237 = vmatprep.subr.bf16.mxu1 %v4391_v3 }
 0xa77   :  { %4239 = vmatpush3.bf16.msra.mxu1 %v4818_v34 }
 0xa78   :  { %4240 = vmatprep.subr.bf16.mxu1 %v4391_v3 }
 0xa7b   :  { %4242 = vmatpush3.bf16.msra.mxu1 %v4828_v36 }
 0xa7c   :  { %4243 = vmatprep.subr.bf16.mxu1 %v4391_v3 }
 0xb07   :  { %v1424_v52 = vpop.f32.mrb[14].mxu0 }
 0xb08   :  { %v4038_v53 = vpop.f32.mrb[15].mxu0 }
 0xb10   :  { %v1500_v54 = vpop.f32.mrb[14].mxu1 }
 0xb11   :  { %1657 = vrot.lane.b32.xlu1 %v1500_v54, %s4400_s24  ;;  %v4043_v55 = vpop.f32.mrb[15].mxu1 }
 0xb37   :  { %v1576_v56 = vpop.f32.mrb[16].mxu0 }
 0xb38   :  { %1661 = vrot.lane.b32.xlu0 %v1576_v56, %s4402_s26  ;;  %v4048_v57 = vpop.f32.mrb[17].mxu0 }
 0xb45   :  { %v1652_v58 = vpop.f32.mrb[16].mxu1 }
 0xb46   :  { %1665 = vrot.lane.b32.xlu1 %v1652_v58, %s4401_s25  ;;  %v4053_v59 = vpop.f32.mrb[17].mxu1 }
 0xb83   :  { %v1658_v60 = vpop.permute.xlu1 %1657 }
 0xb84   :  { %v1668_v31 = vsel %vm172_vm2, %v1424_v52, %v1658_v60  ;;  %v3801_v60 = vld [vmem:[%s5138_s1 + $0x8] sm:$0xff] }
 0xb85   :  { %vm1908_vm10 = vcmp.gt.s32.totalorder %v3801_v60, 0 }
 0xbaa   :  { %v1662_v61 = vpop.permute.xlu0 %1661 }
 0xbab   :  { %v1669_v62 = vsel %vm854_vm7, %v1668_v31, %v1662_v61  ;;  %v1909_v61 = vsel %vm1908_vm10, 1, %v4394_v10 }
 0xbb8   :  { %v1666_v63 = vpop.permute.xlu1 %1665 }
 0xbb9   :  { %v1670_v0 = vsel %vm856_vm8, %v1669_v62, %v1666_v63 }
 0xbba   :  { %v1671_v8 = vadd.f32 %v1670_v0, %v4676_v18  ;;  %v1701_v18 = vld [vmem:[%s5147_s10 + $0x10] sm:$0xff] }
 0xbbb   :  { %v4799_v26 = vpack.c.bf16 %v1702_v24, %v1701_v18 }
 0xbbc   :  { %v1672_v2 = vsel %vm81_vm1, %v1671_v8, 0.0 }
 0xbbd   :  { %1673 = vadd.xlane.f32.xlu0 %v1672_v2  ;;  %4233 = vmatpush3.bf16.msra.mxu0 %v4799_v26 }
 0xbbe   :  { %4246 = vmatprep.subr.bf16.mxu0 %v4391_v3 }
 0xc4a   :  { %v1674_v11 = vpop.xlane.xlu0 %1673 }
 0xc4b   :  { %v1675_v12 = vmul.f32 0.03125, %v1674_v11 }
 0xc4d   :  { %v1676_v13 = vsub.f32 %v1671_v8, %v1675_v12 }
 0xc4f   :  { %v1677_v14 = vmul.f32 %v1676_v13, %v1676_v13 }
 0xc51   :  { %v1678_v19 = vsel %vm81_vm1, %v1677_v14, 0.0 }
 0xc52   :  { %1679 = vadd.xlane.f32.xlu1 %v1678_v19 }
 0xcdf   :  { %v1680_v37 = vpop.xlane.xlu1 %1679 }
 0xce0   :  { %v1681_v38 = vmul.f32 0.03125, %v1680_v37 }
 0xce2   :  { %v1682_v39 = vadd.f32 1e-05, %v1681_v38 }
 0xce4   :  { %4325 = vrsqrt.f32 %v1682_v39 }
 0xcee   :  { %v4326_v40 = vpop.eup %4325 }
 0xcef   :  { %v1684_v42 = vmul.f32 %v4326_v40, %v1676_v13 }
 0xcf1   :  { %v1691_v44 = vmul.f32 %v4836_v41, %v1684_v42 }
 0xcf3   :  { %v4845_v45 = vadd.f32 %v4841_v43, %v1691_v44 }
 0xcf5   :  { %4063 = vmatmul.mubr.msk.f32.vlgmr.msra.gmra.mrb[18].mxu0 %vm81_vm1, %v4845_v45 }
 0xcf6   :  { %4248 = vmatpush3.bf16.msra.mxu0 %v4500_v4  ;;  %4092 = vmatprep.mubr.msk.f32.mxu0 %vm4392_vm0, %v4393_v6  ;;  %v1790_v4 = vld [vmem:[%s5149_s12 + $0x30] sm:$0xff] }
 0xcf7   :  { %4249 = vmatprep.subr.bf16.mxu0 %v4391_v3 }
 0xcfa   :  { %4251 = vmatpush3.bf16.msra.mxu0 %v4511_v7  ;;  %v1791_v7 = vld [vmem:[%s5149_s12 + $0x38] sm:$0xff] }
 0xcfb   :  { %4095 = vmatprep.subr.mxu0 %v4393_v6  ;;  %v4870_v47 = vpack.c.bf16 %v1791_v7, %v1790_v4 }
 0xcfd   :  { %4093 = vmatmul.mubr.msk.f32.vlgmr.msra.gmra.mrb[20].mxu0 %vm81_vm1, %v4857_v46  ;;  %4245 = vmatpush3.bf16.msra.mxu1 %v4870_v47 }
 0xcfe   :  { %4097 = vmatprep.mubr.msk.f32.mxu0 %vm4392_vm0, %v4393_v6  ;;  %4100 = vmatprep.subr.mxu1 %v4393_v6 }
 0xdc8   :  { %v1779_v49 = vpop.f32.mrb[18].mxu0 }
 0xdc9   :  { %v1780_v50 = vadd.f32 %v4877_v48, %v1779_v49  ;;  %v4064_v51 = vpop.f32.mrb[19].mxu0 }
 0xdcb   :  { %v1783_v52 = vmax.f32 %v1780_v50, 0.0 }
 0xdcd   :  { %4082 = vmatmul.mubr.msk.f32.vlgmr.msra.gmra.mrb[18].mxu1 %vm1799_vm9, %v1783_v52 }
 0xdce   :  { %4102 = vmatprep.mubr.msk.f32.mxu1 %vm4392_vm0, %v4393_v6 }
 0xdd0   :  { %v1997_v53 = vpop.f32.mrb[20].mxu0 }
 0xdd1   :  { %v4884_v54 = vadd.f32 %v4528_v9, %v1997_v53  ;;  %v4094_v55 = vpop.f32.mrb[21].mxu0 }
 0xdd3   :  { %2012 = vrot.lane.b32.xlu1 %v4884_v54, %s4398_s3  ;;  %2010 = vrot.lane.b32.xlu0 %v4884_v54, %s4396_s19  ;;  %v2001_v56 = vmul.f32 0.5, %v4884_v54 }
 0xdd7   :  { %2016 = vrot.lane.b32.xlu1 %v4884_v54, %s4397_s20  ;;  %2014 = vrot.lane.b32.xlu0 %v4884_v54, %s4395_s18 }
 0xddb   :  { %2003 = vrot.lane.b32.xlu1 %v2001_v56, %s4396_s19 }
 0xe45   :  { %v4896_v57 = vpop.permute.xlu1 %2012  ;;  %v4898_v9 = vpop.permute.xlu0 %2010 }
 0xe46   :  { %2092 = vrot.lane.b32.xlu0 %v4898_v9, %s4397_s20 }
 0xe49   :  { %v2017_v58 = vpop.permute.xlu1 %2016  ;;  %v4902_v59 = vpop.permute.xlu0 %2014 }
 0xe4a   :  { %4096 = vmatpush3.xpose.msk.msra.mxu0 %vm172_vm2, %v2017_v58  ;;  %2168 = vrot.lane.b32.xlu0 %v4896_v57, %s4397_s20 }
 0xe4b   :  { %2244 = vrot.lane.b32.xlu1 %v4902_v59, %s4397_s20  ;;  %4105 = vmatprep.subr.mxu0 %v4393_v6 }
 0xe4d   :  { %4098 = vmatmul.mubr.msk.f32.vlgmr.msra.gmra.mrb[22].mxu0 %vm172_vm2, %v2001_v56  ;;  %v2004_v0 = vpop.permute.xlu1 %2003 }
 0xe4e   :  { %2005 = vrot.lane.b32.xlu0 %v2001_v56, %s4398_s3  ;;  %4107 = vmatprep.mubr.msk.f32.mxu0 %vm4392_vm0, %v4393_v6 }
 0xe4f   :  { %2007 = vrot.lane.b32.xlu1 %v2001_v56, %s4395_s18 }
 0xe52   :  { %1911 = vperm.xlu0 %4290, %v1909_v61  }
 0xea0   :  { %v4919_v31 = vpop.f32.mrb[18].mxu1 }
 0xea1   :  { %v4083_v62 = vpop.f32.mrb[19].mxu1 }
 0xeb8   :  { %v2093_v63 = vpop.permute.xlu0 %2092 }
 0xeb9   :  { %4101 = vmatpush3.xpose.msk.msra.mxu1 %vm172_vm2, %v2093_v63 }
 0xeba   :  { %4110 = vmatprep.subr.mxu1 %v4393_v6 }
 0xebc   :  { %v2169_v8 = vpop.permute.xlu0 %2168  ;;  %4103 = vmatmul.mubr.msk.f32.vlgmr.msra.gmra.mrb[20].mxu1 %vm172_vm2, %v2004_v0 }
 0xebd   :  { %v2245_v2 = vpop.permute.xlu1 %2244  ;;  %4106 = vmatpush3.xpose.msk.msra.mxu0 %vm172_vm2, %v2169_v8  ;;  %4112 = vmatprep.mubr.msk.f32.mxu1 %vm4392_vm0, %v4393_v6 }
 0xebe   :  { %4111 = vmatpush3.xpose.msk.msra.mxu1 %vm172_vm2, %v2245_v2  ;;  %4115 = vmatprep.subr.mxu0 %v4393_v6 }
 0xebf   :  { %4120 = vmatprep.subr.mxu1 %v4393_v6 }
 0xec0   :  { %v2006_v10 = vpop.permute.xlu0 %2005 }
 0xec1   :  { %v2008_v11 = vpop.permute.xlu1 %2007  ;;  %4108 = vmatmul.mubr.msk.f32.vlgmr.msra.gmra.mrb[24].mxu0 %vm172_vm2, %v2006_v10 }
 0xec2   :  { %4113 = vmatmul.mubr.msk.f32.vlgmr.msra.gmra.mrb[22].mxu1 %vm172_vm2, %v2008_v11  ;;  %4117 = vmatprep.mubr.msk.f32.mxu0 %vm4392_vm0, %v4393_v6 }
 0xec3   :  { %4122 = vmatprep.mubr.msk.f32.mxu1 %vm4392_vm0, %v4393_v6 }
 0xed1   :  { %v1912_v12 = vpop.permute.xlu0 %1911 }
 0xed2   :  { %vm1913_vm11 = vcmp.eq.s32.totalorder %v1912_v12, 1 }
 0xed3   :  { %vm4939_vm12 = vmor %vm1913_vm11, %vm58_vm4 }
 0xf20   :  { %v2088_v14 = vpop.f32.mrb[22].mxu0 }
 0xf21   :  { %v2322_v19 = vsel %vm4939_vm12, 1e-09, %v2088_v14  ;;  %v4099_v21 = vpop.f32.mrb[23].mxu0 }
 0xf22   :  { %v2326_v22 = vsel %vm172_vm2, %v2322_v19, -inf }
 0xf23   :  { %2327 = vmax.xlane.f32.xlu1 %v2326_v22 }
 0xf8f   :  { %v2164_v18 = vpop.f32.mrb[20].mxu1 }
 0xf90   :  { %v2323_v24 = vsel %vm4939_vm12, 1e-09, %v2164_v18  ;;  %v4104_v15 = vpop.f32.mrb[21].mxu1 }
 0xf91   :  { %v2329_v30 = vsel %vm172_vm2, %v2323_v24, -inf }
 0xf92   :  { %2330 = vmax.xlane.f32.xlu0 %v2329_v30 }
 0xf94   :  { %v2240_v28 = vpop.f32.mrb[24].mxu0 }
 0xf95   :  { %v2324_v29 = vsel %vm4939_vm12, 1e-09, %v2240_v28  ;;  %v2316_v32 = vpop.f32.mrb[22].mxu1  ;;  %v4109_v33 = vpop.f32.mrb[25].mxu0 }
 0xf96   :  { %v2325_v35 = vsel %vm4939_vm12, 1e-09, %v2316_v32  ;;  %v4114_v25 = vpop.f32.mrb[23].mxu1  ;;  %v2332_v37 = vsel %vm172_vm2, %v2324_v29, -inf }
 0xf97   :  { %v2335_v38 = vsel %vm172_vm2, %v2325_v35, -inf  ;;  %2333 = vmax.xlane.f32.xlu0 %v2332_v37 }
 0xf98   :  { %2336 = vmax.xlane.f32.xlu1 %v2335_v38 }
 0xfb0   :  { %v2328_v39 = vpop.xlane.xlu1 %2327 }
 0xfb1   :  { %v2338_v40 = vsub.f32 %v2322_v19, %v2328_v39 }
 0xfb3   :  { %v2342_v42 = vmul.f32 1.442695, %v2338_v40 }
 0xfb5   :  { %4327 = vpow2.f32 %v2342_v42 }
 0xfbf   :  { %v4328_v44 = vpop.eup %4327 }
 0xfc0   :  { %v2350_v4 = vsel %vm172_vm2, %v4328_v44, 0.0 }
 0xfc1   :  { %2351 = vadd.xlane.f32.xlu0 %v2350_v4 }
0x101f   :  { %v2331_v7 = vpop.xlane.xlu0 %2330 }
0x1020   :  { %v2339_v49 = vsub.f32 %v2323_v24, %v2331_v7 }
0x1022   :  { %v2344_v50 = vmul.f32 1.442695, %v2339_v49 }
0x1024   :  { %4329 = vpow2.f32 %v2344_v50  ;;  %v2334_v51 = vpop.xlane.xlu0 %2333 }
0x1025   :  { %v2340_v52 = vsub.f32 %v2324_v29, %v2334_v51  ;;  %v2337_v61 = vpop.xlane.xlu1 %2336 }
0x1026   :  { %v2341_v62 = vsub.f32 %v2325_v35, %v2337_v61 }
0x1027   :  { %v2346_v53 = vmul.f32 1.442695, %v2340_v52 }
0x1028   :  { %v2348_v63 = vmul.f32 1.442695, %v2341_v62 }
0x1029   :  { %4331 = vpow2.f32 %v2346_v53 }
0x102a   :  { %4333 = vpow2.f32 %v2348_v63 }
0x102e   :  { %v4330_v55 = vpop.eup %4329 }
0x102f   :  { %v2353_v56 = vsel %vm172_vm2, %v4330_v55, 0.0 }
0x1030   :  { %2354 = vadd.xlane.f32.xlu1 %v2353_v56 }
0x1033   :  { %v4332_v58 = vpop.eup %4331 }
0x1034   :  { %v2356_v60 = vsel %vm172_vm2, %v4332_v58, 0.0  ;;  %v4334_v0 = vpop.eup %4333 }
0x1035   :  { %2357 = vadd.xlane.f32.xlu0 %v2356_v60  ;;  %v2359_v8 = vsel %vm172_vm2, %v4334_v0, 0.0 }
0x1041   :  { %2458 = vrot.lane.b32.xlu1 %v4898_v9, %s4399_s23 }
0x104b   :  { %2382 = vrot.lane.b32.xlu0 %v4884_v54, %s4399_s23 }
0x104e   :  { %v2352_v2 = vpop.xlane.xlu0 %2351 }
0x104f   :  { %2610 = vrot.lane.b32.xlu0 %v4902_v59, %s4399_s23  ;;  %4335 = vrcp.f32 %v2352_v2 }
0x1059   :  { %v4336_v9 = vpop.eup %4335 }
0x105a   :  { %v2366_v10 = vmul.f32 %v4336_v9, %v2352_v2 }
0x105c   :  { %v2370_v54 = vsub.f32 2.0, %v2366_v10 }
0x105e   :  { %v2374_v14 = vmul.f32 %v4336_v9, %v2370_v54 }
0x1060   :  { %v2378_v19 = vmul.f32 %v4328_v44, %v2374_v14 }
0x1065   :  { %2360 = vadd.xlane.f32.xlu1 %v2359_v8 }
0x1076   :  { %2534 = vrot.lane.b32.xlu1 %v4896_v57, %s4399_s23 }
0x10bd   :  { %v2355_v11 = vpop.xlane.xlu1 %2354 }
0x10be   :  { %4337 = vrcp.f32 %v2355_v11 }
0x10c1   :  { %v2459_v12 = vpop.permute.xlu1 %2458 }
0x10c2   :  { %4121 = vmatpush3.msra.mxu1 %v2459_v12  ;;  %v2358_v59 = vpop.xlane.xlu0 %2357 }
0x10c3   :  { %4130 = vmatprep.subr.mxu1 %v4393_v6  ;;  %4339 = vrcp.f32 %v2358_v59 }
0x10c6   :  { %v2383_v21 = vpop.permute.xlu0 %2382 }
0x10c7   :  { %4116 = vmatpush3.msra.mxu0 %v2383_v21 }
0x10c8   :  { %v4338_v22 = vpop.eup %4337  ;;  %4118 = vmatmul.mubr.msk.f32.vlgmr.msra.gmra.mrb[26].mxu0 %vm172_vm2, %v2378_v19  ;;  %4125 = vmatprep.subr.mxu0 %v4393_v6 }
0x10c9   :  { %v2367_v57 = vmul.f32 %v4338_v22, %v2355_v11  ;;  %4127 = vmatprep.mubr.msk.f32.mxu0 %vm4392_vm0, %v4393_v6 }
0x10ca   :  { %v2611_v30 = vpop.permute.xlu0 %2610 }
0x10cb   :  { %v2371_v18 = vsub.f32 2.0, %v2367_v57 }
0x10cd   :  { %v2375_v24 = vmul.f32 %v4338_v22, %v2371_v18  ;;  %v4340_v28 = vpop.eup %4339 }
0x10ce   :  { %v2368_v29 = vmul.f32 %v4340_v28, %v2358_v59 }
0x10cf   :  { %v2379_v15 = vmul.f32 %v4330_v55, %v2375_v24 }
0x10d0   :  { %v2372_v32 = vsub.f32 2.0, %v2368_v29 }
0x10d1   :  { %4123 = vmatmul.mubr.msk.f32.vlgmr.msra.gmra.mrb[24].mxu1 %vm172_vm2, %v2379_v15 }
0x10d2   :  { %4131 = vmatpush3.msra.mxu1 %v2611_v30  ;;  %4132 = vmatprep.mubr.msk.f32.mxu1 %vm4392_vm0, %v4393_v6  ;;  %v2376_v33 = vmul.f32 %v4340_v28, %v2372_v32 }
0x10d3   :  { %4146 = vmatprep.subr.mxu1 %v4393_v6 }
0x10d4   :  { %v2380_v25 = vmul.f32 %v4332_v58, %v2376_v33 }
0x10f2   :  { %v2361_v35 = vpop.xlane.xlu1 %2360 }
0x10f3   :  { %4341 = vrcp.f32 %v2361_v35 }
0x10f6   :  { %v2535_v37 = vpop.permute.xlu1 %2534 }
0x10f7   :  { %4126 = vmatpush3.msra.mxu0 %v2535_v37 }
0x10f8   :  { %4128 = vmatmul.mubr.msk.f32.vlgmr.msra.gmra.mrb[28].mxu0 %vm172_vm2, %v2380_v25  ;;  %4252 = vmatprep.subr.bf16.mxu0 %v4391_v3 }
0x10f9   :  { %4254 = vmatpush3.bf16.msra.mxu0 %v4650_v1  ;;  %4143 = vmatprep.mubr.msk.f32.mxu0 %vm4392_vm0, %v4393_v6 }
0x10fa   :  { %4255 = vmatprep.subr.bf16.mxu0 %v4391_v3 }
0x10fd   :  { %v4342_v38 = vpop.eup %4341  ;;  %4257 = vmatpush3.bf16.msra.mxu0 %v4660_v5 }
0x10fe   :  { %v2369_v39 = vmul.f32 %v4342_v38, %v2361_v35  ;;  %4156 = vmatprep.subr.mxu0 %v4393_v6 }
0x1100   :  { %v2373_v40 = vsub.f32 2.0, %v2369_v39 }
0x1102   :  { %v2377_v42 = vmul.f32 %v4342_v38, %v2373_v40 }
0x1104   :  { %v2381_v44 = vmul.f32 %v4334_v0, %v2377_v42 }
0x1106   :  { %4133 = vmatmul.mubr.msk.f32.vlgmr.msra.gmra.mrb[26].mxu1 %vm172_vm2, %v2381_v44 }
0x1107   :  { %4148 = vmatprep.mubr.msk.f32.mxu1 %vm4392_vm0, %v4393_v6 }
0x119b   :  { %v2454_v1 = vpop.f32.mrb[26].mxu0 }
0x119c   :  { %v4119_v4 = vpop.f32.mrb[27].mxu0 }
0x11a4   :  { %v2530_v7 = vpop.f32.mrb[24].mxu1 }
0x11a5   :  { %2687 = vrot.lane.b32.xlu1 %v2530_v7, %s4400_s24  ;;  %v4124_v49 = vpop.f32.mrb[25].mxu1 }
0x11cb   :  { %v2606_v50 = vpop.f32.mrb[28].mxu0 }
0x11cc   :  { %2691 = vrot.lane.b32.xlu0 %v2606_v50, %s4402_s26  ;;  %v4129_v5 = vpop.f32.mrb[29].mxu0 }
0x11d9   :  { %v2682_v51 = vpop.f32.mrb[26].mxu1 }
0x11da   :  { %2695 = vrot.lane.b32.xlu1 %v2682_v51, %s4401_s25  ;;  %v4134_v52 = vpop.f32.mrb[27].mxu1 }
0x1217   :  { %v2688_v53 = vpop.permute.xlu1 %2687 }
0x1218   :  { %v2698_v56 = vsel %vm172_vm2, %v2454_v1, %v2688_v53 }
0x123e   :  { %v2692_v55 = vpop.permute.xlu0 %2691 }
0x123f   :  { %v2699_v58 = vsel %vm854_vm7, %v2698_v56, %v2692_v55 }
0x124c   :  { %v2696_v60 = vpop.permute.xlu1 %2695 }
0x124d   :  { %v2700_v61 = vsel %vm856_vm8, %v2699_v58, %v2696_v60 }
0x124e   :  { %v2701_v62 = vadd.f32 %v4857_v46, %v2700_v61 }
0x1250   :  { %v2702_v63 = vsel %vm81_vm1, %v2701_v62, 0.0 }
0x1251   :  { %2703 = vadd.xlane.f32.xlu0 %v2702_v63 }
0x12de   :  { %v2704_v0 = vpop.xlane.xlu0 %2703 }
0x12df   :  { %v2705_v8 = vmul.f32 0.03125, %v2704_v0 }
0x12e1   :  { %v2706_v2 = vsub.f32 %v2701_v62, %v2705_v8 }
0x12e3   :  { %v2707_v9 = vmul.f32 %v2706_v2, %v2706_v2 }
0x12e5   :  { %v2708_v10 = vsel %vm81_vm1, %v2707_v9, 0.0 }
0x12e6   :  { %2709 = vadd.xlane.f32.xlu1 %v2708_v10 }
0x1373   :  { %v2710_v11 = vpop.xlane.xlu1 %2709 }
0x1374   :  { %v2711_v54 = vmul.f32 0.03125, %v2710_v11 }
0x1376   :  { %v2712_v12 = vadd.f32 1e-05, %v2711_v54 }
0x1378   :  { %4343 = vrsqrt.f32 %v2712_v12 }
0x1382   :  { %v4344_v14 = vpop.eup %4343 }
0x1383   :  { %v2714_v59 = vmul.f32 %v4344_v14, %v2706_v2 }
0x1385   :  { %v2721_v19 = vmul.f32 %v4667_v17, %v2714_v59 }
0x1387   :  { %v4998_v46 = vadd.f32 %v4672_v20, %v2721_v19 }
0x1389   :  { %4144 = vmatmul.mubr.msk.f32.vlgmr.msra.gmra.mrb[30].mxu0 %vm81_vm1, %v4998_v46 }
0x138a   :  { %4158 = vmatprep.mubr.msk.f32.mxu0 %vm4392_vm0, %v4393_v6 }
0x145c   :  { %v2811_v21 = vpop.f32.mrb[30].mxu0 }
0x145d   :  { %v2812_v22 = vadd.f32 %v4685_v16, %v2811_v21  ;;  %v4145_v57 = vpop.f32.mrb[31].mxu0 }
0x145f   :  { %2826 = vrot.lane.b32.xlu1 %v2812_v22, %s4398_s3  ;;  %2824 = vrot.lane.b32.xlu0 %v2812_v22, %s4396_s19  ;;  %v2815_v17 = vmul.f32 0.5, %v2812_v22 }
0x1463   :  { %2830 = vrot.lane.b32.xlu1 %v2812_v22, %s4397_s20  ;;  %2828 = vrot.lane.b32.xlu0 %v2812_v22, %s4395_s18 }
0x1467   :  { %2817 = vrot.lane.b32.xlu1 %v2815_v17, %s4396_s19 }
0x14d1   :  { %v5010_v20 = vpop.permute.xlu1 %2826  ;;  %v5012_v18 = vpop.permute.xlu0 %2824 }
0x14d2   :  { %2906 = vrot.lane.b32.xlu0 %v5012_v18, %s4397_s20 }
0x14d5   :  { %v2831_v16 = vpop.permute.xlu1 %2830  ;;  %v5016_v24 = vpop.permute.xlu0 %2828 }
0x14d6   :  { %4147 = vmatpush3.xpose.msk.msra.mxu1 %vm172_vm2, %v2831_v16  ;;  %2982 = vrot.lane.b32.xlu0 %v5010_v20, %s4397_s20 }
0x14d7   :  { %3058 = vrot.lane.b32.xlu1 %v5016_v24, %s4397_s20  ;;  %4151 = vmatprep.subr.mxu1 %v4393_v6 }
0x14d9   :  { %4149 = vmatmul.mubr.msk.f32.vlgmr.msra.gmra.mrb[28].mxu1 %vm172_vm2, %v2815_v17  ;;  %v2818_v30 = vpop.permute.xlu1 %2817 }
0x14da   :  { %2819 = vrot.lane.b32.xlu0 %v2815_v17, %s4398_s3  ;;  %4153 = vmatprep.mubr.msk.f32.mxu1 %vm4392_vm0, %v4393_v6 }
0x14db   :  { %2821 = vrot.lane.b32.xlu1 %v2815_v17, %s4395_s18 }
0x1544   :  { %v2907_v15 = vpop.permute.xlu0 %2906 }
0x1545   :  { %4152 = vmatpush3.xpose.msk.msra.mxu1 %vm172_vm2, %v2907_v15 }
0x1546   :  { %4161 = vmatprep.subr.mxu1 %v4393_v6 }
0x1548   :  { %v2983_v28 = vpop.permute.xlu0 %2982  ;;  %4154 = vmatmul.mubr.msk.f32.vlgmr.msra.gmra.mrb[30].mxu1 %vm172_vm2, %v2818_v30 }
0x1549   :  { %v3059_v29 = vpop.permute.xlu1 %3058  ;;  %4157 = vmatpush3.xpose.msk.msra.mxu0 %vm172_vm2, %v2983_v28  ;;  %4163 = vmatprep.mubr.msk.f32.mxu1 %vm4392_vm0, %v4393_v6 }
0x154a   :  { %4162 = vmatpush3.xpose.msk.msra.mxu1 %vm172_vm2, %v3059_v29  ;;  %4166 = vmatprep.subr.mxu0 %v4393_v6 }
0x154b   :  { %4171 = vmatprep.subr.mxu1 %v4393_v6 }
0x154c   :  { %v2820_v32 = vpop.permute.xlu0 %2819 }
0x154d   :  { %v2822_v33 = vpop.permute.xlu1 %2821  ;;  %4159 = vmatmul.mubr.msk.f32.vlgmr.msra.gmra.mrb[32].mxu0 %vm172_vm2, %v2820_v32 }
0x154e   :  { %4164 = vmatmul.mubr.msk.f32.vlgmr.msra.gmra.mrb[32].mxu1 %vm172_vm2, %v2822_v33  ;;  %4168 = vmatprep.mubr.msk.f32.mxu0 %vm4392_vm0, %v4393_v6 }
0x154f   :  { %4173 = vmatprep.mubr.msk.f32.mxu1 %vm4392_vm0, %v4393_v6 }
0x15ac   :  { %v2902_v35 = vpop.f32.mrb[28].mxu1 }
0x15ad   :  { %v3134_v25 = vsel %vm4939_vm12, 1e-09, %v2902_v35  ;;  %v4150_v37 = vpop.f32.mrb[29].mxu1 }
0x15ae   :  { %v3138_v38 = vsel %vm172_vm2, %v3134_v25, -inf }
0x15af   :  { %3139 = vmax.xlane.f32.xlu0 %v3138_v38 }
0x161b   :  { %v2978_v39 = vpop.f32.mrb[30].mxu1 }
0x161c   :  { %v3135_v40 = vsel %vm4939_vm12, 1e-09, %v2978_v39  ;;  %v4155_v42 = vpop.f32.mrb[31].mxu1 }
0x161d   :  { %v3141_v44 = vsel %vm172_vm2, %v3135_v40, -inf }
0x161e   :  { %3142 = vmax.xlane.f32.xlu1 %v3141_v44 }
0x1620   :  { %v3054_v1 = vpop.f32.mrb[32].mxu0 }
0x1621   :  { %v3136_v4 = vsel %vm4939_vm12, 1e-09, %v3054_v1  ;;  %v3130_v7 = vpop.f32.mrb[32].mxu1  ;;  %v4160_v49 = vpop.f32.mrb[33].mxu0 }
0x1622   :  { %v4165_v50 = vpop.f32.mrb[33].mxu1  ;;  %v3144_v5 = vsel %vm172_vm2, %v3136_v4, -inf  ;;  %v3137_v51 = vsel %vm4939_vm12, 1e-09, %v3130_v7 }
0x1623   :  { %3145 = vmax.xlane.f32.xlu0 %v3144_v5  ;;  %v3147_v52 = vsel %vm172_vm2, %v3137_v51, -inf }
0x1627   :  { %3148 = vmax.xlane.f32.xlu0 %v3147_v52 }
0x162f   :  { %3194 = vrot.lane.b32.xlu1 %v2812_v22, %s4399_s23 }
0x163c   :  { %v3140_v53 = vpop.xlane.xlu0 %3139 }
0x163d   :  { %v3150_v55 = vsub.f32 %v3134_v25, %v3140_v53 }
0x163f   :  { %v3154_v56 = vmul.f32 1.442695, %v3150_v55 }
0x1641   :  { %4345 = vpow2.f32 %v3154_v56 }
0x164b   :  { %v4346_v58 = vpop.eup %4345 }
0x164c   :  { %v3162_v60 = vsel %vm172_vm2, %v4346_v58, 0.0 }
0x1653   :  { %3163 = vadd.xlane.f32.xlu1 %v3162_v60 }
0x16ab   :  { %v3143_v61 = vpop.xlane.xlu1 %3142 }
0x16ac   :  { %v3151_v62 = vsub.f32 %v3135_v40, %v3143_v61 }
0x16ae   :  { %v3156_v63 = vmul.f32 1.442695, %v3151_v62  ;;  %v3796_v62 = vld [vmem:[%s5150_s13] ss:$0 sm:$0xff] }
0x16af   :  { %v3195_v0 = vpop.permute.xlu1 %3194 }
0x16b0   :  { %4347 = vpow2.f32 %v3156_v63  ;;  %4167 = vmatpush3.msra.mxu0 %v3195_v0  ;;  %v3146_v13 = vpop.xlane.xlu0 %3145 }
0x16b1   :  { %v3152_v8 = vsub.f32 %v3136_v4, %v3146_v13  ;;  %4176 = vmatprep.subr.mxu0 %v4393_v6  ;;  %v1870_v13 = vadd.f32 %v3796_v62, %v4919_v31 }
0x16b3   :  { %v3158_v2 = vmul.f32 1.442695, %v3152_v8 }
0x16b4   :  { %v3149_v9 = vpop.xlane.xlu0 %3148 }
0x16b5   :  { %4349 = vpow2.f32 %v3158_v2  ;;  %v3153_v10 = vsub.f32 %v3137_v51, %v3149_v9  ;;  %v1873_v9 = vadd.f32 %v1870_v13, %v4845_v45 }
0x16b7   :  { %v3160_v11 = vmul.f32 1.442695, %v3153_v10 }
0x16b9   :  { %4351 = vpow2.f32 %v3160_v11 }
0x16ba   :  { %v4348_v54 = vpop.eup %4347 }
0x16bb   :  { %v3165_v12 = vsel %vm172_vm2, %v4348_v54, 0.0 }
0x16bc   :  { %3166 = vadd.xlane.f32.xlu0 %v3165_v12 }
0x16bf   :  { %v4350_v14 = vpop.eup %4349 }
0x16c0   :  { %v3168_v59 = vsel %vm172_vm2, %v4350_v14, 0.0 }
0x16c1   :  { %3169 = vadd.xlane.f32.xlu1 %v3168_v59 }
0x16c3   :  { %v4352_v19 = vpop.eup %4351 }
0x16c4   :  { %v3171_v21 = vsel %vm172_vm2, %v4352_v19, 0.0 }
0x16c5   :  { %3172 = vadd.xlane.f32.xlu0 %v3171_v21 }
0x16d2   :  { %3346 = vrot.lane.b32.xlu1 %v5010_v20, %s4399_s23 }
0x16d6   :  { %3422 = vrot.lane.b32.xlu1 %v5016_v24, %s4399_s23 }
0x16db   :  { %3270 = vrot.lane.b32.xlu0 %v5012_v18, %s4399_s23 }
0x16e0   :  { %v3164_v22 = vpop.xlane.xlu1 %3163 }
0x16e1   :  { %4353 = vrcp.f32 %v3164_v22 }
0x16eb   :  { %v4354_v57 = vpop.eup %4353 }
0x16ec   :  { %v3178_v17 = vmul.f32 %v4354_v57, %v3164_v22 }
0x16ee   :  { %v3182_v16 = vsub.f32 2.0, %v3178_v17 }
0x16f0   :  { %v3186_v15 = vmul.f32 %v4354_v57, %v3182_v16 }
0x16f2   :  { %v3190_v30 = vmul.f32 %v4346_v58, %v3186_v15 }
0x16f4   :  { %4169 = vmatmul.mubr.msk.f32.vlgmr.msra.gmra.mrb[34].mxu0 %vm172_vm2, %v3190_v30 }
0x16f5   :  { %4178 = vmatprep.mubr.msk.f32.mxu0 %vm4392_vm0, %v4393_v6 }
0x1749   :  { %v3167_v28 = vpop.xlane.xlu0 %3166 }
0x174a   :  { %4355 = vrcp.f32 %v3167_v28 }
0x174e   :  { %v3170_v20 = vpop.xlane.xlu1 %3169 }
0x174f   :  { %4357 = vrcp.f32 %v3170_v20 }
0x1752   :  { %v3347_v24 = vpop.permute.xlu1 %3346  ;;  %v3173_v29 = vpop.xlane.xlu0 %3172 }
0x1753   :  { %4359 = vrcp.f32 %v3173_v29  ;;  %4177 = vmatpush3.msra.mxu0 %v3347_v24 }
0x1754   :  { %v4356_v18 = vpop.eup %4355  ;;  %4258 = vmatprep.subr.bf16.mxu0 %v4391_v3 }
0x1755   :  { %v3179_v32 = vmul.f32 %v4356_v18, %v3167_v28 }
0x1756   :  { %v3271_v33 = vpop.permute.xlu0 %3270  ;;  %v3423_v44 = vpop.permute.xlu1 %3422 }
0x1757   :  { %v3183_v35 = vsub.f32 2.0, %v3179_v32  ;;  %4172 = vmatpush3.msra.mxu1 %v3271_v33 }
0x1758   :  { %4181 = vmatprep.subr.mxu1 %v4393_v6 }
0x1759   :  { %v4358_v25 = vpop.eup %4357  ;;  %v3187_v37 = vmul.f32 %v4356_v18, %v3183_v35 }
0x175a   :  { %v3180_v38 = vmul.f32 %v4358_v25, %v3170_v20  ;;  %v3798_v20 = vld [vmem:[%s5151_s14] ss:$0 sm:$0xff]  ;;  %s4403_s14 = smov [#allocation2]  }
0x175b   :  { %v3191_v39 = vmul.f32 %v4348_v54, %v3187_v37 }
0x175c   :  { %v3184_v40 = vsub.f32 2.0, %v3180_v38 }
0x175d   :  { %v4360_v42 = vpop.eup %4359  ;;  %4174 = vmatmul.mubr.msk.f32.vlgmr.msra.gmra.mrb[34].mxu1 %vm172_vm2, %v3191_v39 }
0x175e   :  { %v3188_v1 = vmul.f32 %v4358_v25, %v3184_v40  ;;  %v3181_v4 = vmul.f32 %v4360_v42, %v3173_v29  ;;  %4182 = vmatpush3.msra.mxu1 %v3423_v44  ;;  %4183 = vmatprep.mubr.msk.f32.mxu1 %vm4392_vm0, %v4393_v6  ;;  %v3799_v29 = vld [vmem:[%s5152_s15] ss:$0 sm:$0xff]  ;;  %s3751_s15 = sshll.u32 %s4403_s14, 4  ;;  %s3752_s15 = int_to_ptr.vmem [resolvable:$true] %s3751_s15 }
0x175f   :  { %4264 = vmatprep.subr.bf16.mxu1 %v4391_v3  ;;  %s4367_s23 = scalar_lea.vmem %s3752_s15, 256  ;;  %p4372_p1 = scmp.lt.s32.totalorder %s3752_s15, %s3752_s15 }
0x1760   :  { %v3192_v7 = vmul.f32 %v4350_v14, %v3188_v1  ;;  %v3185_v49 = vsub.f32 2.0, %v3181_v4  ;;  %p4368_p0 = scmp.ne.s32.totalorder %s3752_s15, %s4367_s23  ;;  %p4373_p2 = scmp.lt.s32.totalorder %s4367_s23, %s4367_s23 }
0x1762   :  { %v3189_v50 = vmul.f32 %v4360_v42, %v3185_v49  ;;  %4179 = vmatmul.mubr.msk.f32.vlgmr.msra.gmra.mrb[36].mxu0 %vm172_vm2, %v3192_v7  ;;  %p4374_p3 = por %p4373_p2, %p4372_p1 }
0x1763   :  { %4260 = vmatpush3.bf16.msra.mxu0 %v4789_v23  ;;  %4194 = vmatprep.mubr.msk.f32.mxu0 %vm4392_vm0, %v4393_v6 }
0x1764   :  { %v3193_v5 = vmul.f32 %v4352_v19, %v3189_v50  ;;  %4261 = vmatprep.subr.bf16.mxu0 %v4391_v3  ;;  %p4375_p4 = pnand %p4374_p3, %p4368_p0 }
0x1766   :  { %4184 = vmatmul.mubr.msk.f32.vlgmr.msra.gmra.mrb[36].mxu1 %vm172_vm2, %v3193_v5 }
0x1767   :  { %4263 = vmatpush3.bf16.msra.mxu0 %v4799_v26  ;;  %4266 = vmatpush3.bf16.msra.mxu1 %v4812_v27 }
0x1768   :  { %4267 = vmatprep.subr.bf16.mxu1 %v4391_v3  ;;  %4213 = vmatprep.mubr.msk.f32.mxu1 %vm4392_vm0, %v4393_v6 }
0x176b   :  { %4269 = vmatpush3.bf16.msra.mxu1 %v4818_v34 }
0x176c   :  { %4270 = vmatprep.subr.bf16.mxu1 %v4391_v3 }
0x176f   :  { %4272 = vmatpush3.bf16.msra.mxu1 %v4828_v36 }
0x1770   :  { %4273 = vmatprep.subr.bf16.mxu1 %v4391_v3 }
0x1773   :  { %4275 = vmatpush3.bf16.msra.mxu1 %v4870_v47 }
0x17c7   :  { %v3266_v23 = vpop.f32.mrb[34].mxu0 }
0x17c8   :  { %v4170_v51 = vpop.f32.mrb[35].mxu0 }
0x1830   :  { %v3342_v26 = vpop.f32.mrb[34].mxu1 }
0x1831   :  { %3499 = vrot.lane.b32.xlu0 %v3342_v26, %s4400_s24  ;;  %v4175_v27 = vpop.f32.mrb[35].mxu1 }
0x1835   :  { %v3418_v52 = vpop.f32.mrb[36].mxu0 }
0x1836   :  { %3503 = vrot.lane.b32.xlu1 %v3418_v52, %s4402_s26  ;;  %v4180_v6 = vpop.f32.mrb[37].mxu0 }
0x1839   :  { %v3494_v53 = vpop.f32.mrb[36].mxu1 }
0x183a   :  { %3507 = vrot.lane.b32.xlu0 %v3494_v53, %s4401_s25  ;;  %v4185_v34 = vpop.f32.mrb[37].mxu1 }
0x18a3   :  { %v3500_v55 = vpop.permute.xlu0 %3499 }
0x18a4   :  { %v3510_v3 = vsel %vm172_vm2, %v3266_v23, %v3500_v55 }
0x18a8   :  { %v3504_v36 = vpop.permute.xlu1 %3503 }
0x18a9   :  { %v3511_v47 = vsel %vm854_vm7, %v3510_v3, %v3504_v36 }
0x18ac   :  { %v3508_v56 = vpop.permute.xlu0 %3507 }
0x18ad   :  { %v3512_v58 = vsel %vm856_vm8, %v3511_v47, %v3508_v56 }
0x18ae   :  { %v3513_v60 = vadd.f32 %v3512_v58, %v4998_v46  ;;  %v1876_v46 = vsel %vm81_vm1, %v1873_v9, 0.0 }
0x18b0   :  { %v3514_v61 = vsel %vm81_vm1, %v3513_v60, 0.0 }
0x18b1   :  { %3515 = vadd.xlane.f32.xlu1 %v3514_v61 }
0x193e   :  { %v3516_v63 = vpop.xlane.xlu1 %3515 }
0x193f   :  { %v3517_v0 = vmul.f32 0.03125, %v3516_v63 }
0x1941   :  { %v3518_v8 = vsub.f32 %v3513_v60, %v3517_v0 }
0x1943   :  { %v3519_v2 = vmul.f32 %v3518_v8, %v3518_v8 }
0x1945   :  { %v3520_v10 = vsel %vm81_vm1, %v3519_v2, 0.0 }
0x1946   :  { %3521 = vadd.xlane.f32.xlu0 %v3520_v10 }
0x194a   :  { %1877 = vadd.xlane.f32.xlu0 %v1876_v46 }
0x19d3   :  { %v3522_v11 = vpop.xlane.xlu0 %3521 }
0x19d4   :  { %v3523_v54 = vmul.f32 0.03125, %v3522_v11 }
0x19d6   :  { %v3524_v12 = vadd.f32 1e-05, %v3523_v54 }
0x19d7   :  { %v1878_v14 = vpop.xlane.xlu0 %1877 }
0x19d8   :  { %4361 = vrsqrt.f32 %v3524_v12  ;;  %v1879_v59 = vmul.f32 0.03125, %v1878_v14 }
0x19da   :  { %v1880_v19 = vsub.f32 %v1873_v9, %v1879_v59 }
0x19dc   :  { %v1881_v21 = vmul.f32 %v1880_v19, %v1880_v19 }
0x19de   :  { %v1882_v31 = vsel %vm81_vm1, %v1881_v21, 0.0 }
0x19df   :  { %1883 = vadd.xlane.f32.xlu0 %v1882_v31 }
0x19e2   :  { %v4362_v22 = vpop.eup %4361 }
0x19e3   :  { %v3526_v57 = vmul.f32 %v4362_v22, %v3518_v8 }
0x19e5   :  { %v3533_v45 = vmul.f32 %v4836_v41, %v3526_v57 }
0x19e7   :  { %v3540_v17 = vadd.f32 %v4841_v43, %v3533_v45 }
0x19e9   :  { %4195 = vmatmul.mubr.msk.f32.vlgmr.msra.gmra.mrb[38].mxu0 %vm81_vm1, %v3540_v17 }
0x1a6c   :  { %v1884_v16 = vpop.xlane.xlu0 %1883 }
0x1a6d   :  { %v1885_v15 = vmul.f32 0.03125, %v1884_v16 }
0x1a6f   :  { %v1886_v30 = vadd.f32 1e-05, %v1885_v15 }
0x1a71   :  { %4363 = vrsqrt.f32 %v1886_v30 }
0x1a7b   :  { %v4364_v28 = vpop.eup %4363 }
0x1a7c   :  { %v1888_v24 = vmul.f32 %v4364_v28, %v1880_v19 }
0x1a7e   :  { %v1895_v18 = vmul.f32 %v3798_v20, %v1888_v24 }
0x1a80   :  { %v1902_v41 = vadd.f32 %v3799_v29, %v1895_v18 }
0x1a82   :  { %1903 = vst.msk [vmem:[#allocation2] sm:$0xff] %vm81_vm1, %v1902_v41 }
0x1abc   :  { %v3621_v43 = vpop.f32.mrb[38].mxu0 }
0x1abd   :  { %v3622_v32 = vadd.f32 %v4877_v48, %v3621_v43  ;;  %v4196_v33 = vpop.f32.mrb[39].mxu0 }
0x1abf   :  { %v3625_v35 = vmax.f32 %v3622_v32, 0.0 }
0x1ac1   :  { %4214 = vmatmul.mubr.msk.f32.vlgmr.msra.gmra.mrb[38].mxu1 %vm1799_vm9, %v3625_v35 }
0x1b94   :  { %v3710_v25 = vpop.f32.mrb[38].mxu1 }
0x1b95   :  { %v3711_v37 = vadd.f32 %v3796_v62, %v3710_v25  ;;  %v4215_v38 = vpop.f32.mrb[39].mxu1 }
0x1b97   :  { %v3714_v39 = vadd.f32 %v3711_v37, %v3540_v17 }
0x1b99   :  { %v3717_v40 = vsel %vm81_vm1, %v3714_v39, 0.0 }
0x1b9a   :  { %3718 = vadd.xlane.f32.xlu1 %v3717_v40 }
0x1c27   :  { %v3719_v42 = vpop.xlane.xlu1 %3718 }
0x1c28   :  { %v3720_v44 = vmul.f32 0.03125, %v3719_v42 }
0x1c2a   :  { %v3721_v1 = vsub.f32 %v3714_v39, %v3720_v44 }
0x1c2c   :  { %v3722_v4 = vmul.f32 %v3721_v1, %v3721_v1 }
0x1c2e   :  { %v3723_v7 = vsel %vm81_vm1, %v3722_v4, 0.0 }
0x1c2f   :  { %3724 = vadd.xlane.f32.xlu1 %v3723_v7 }
0x1cbc   :  { %v3725_v49 = vpop.xlane.xlu1 %3724 }
0x1cbd   :  { %v3726_v48 = vmul.f32 0.03125, %v3725_v49 }
0x1cbf   :  { %v3727_v50 = vadd.f32 1e-05, %v3726_v48 }
0x1cc1   :  { %4365 = vrsqrt.f32 %v3727_v50 }
0x1ccb   :  { %v4366_v5 = vpop.eup %4365 }
0x1ccc   :  { %v3729_v23 = vmul.f32 %v4366_v5, %v3721_v1 }
0x1cce   :  { %v3736_v51 = vmul.f32 %v3798_v20, %v3729_v23 }
0x1cd0   :  { %v3743_v26 = vadd.f32 %v3799_v29, %v3736_v51 }
0x1cd2   :  { %3745 = vst.msk [vmem:[#allocation2 + $0x8] sm:$0xff] %vm81_vm1, %v3743_v26 }
0x1cd3   :  { %4378 = shalt.err (!%p4375_p4)
}
0x1cd4   :  { %s4379_s17 = scalar_lea.hbm %s5153_s16, 256 }
0x1cd5   :  { %p4380_p5 = scmp.ne.s32.totalorder %s5153_s16, %s4379_s17  ;;  %p4383_p6 = scmp.lt.u32.totalorder %s4379_s17, %s5153_s16 }
0x1cd7   :  { %p4385_p7 = pnand %p4383_p6, %p4380_p5 }
0x1cd9   :  { %4388 = shalt.err (!%p4385_p7)
}
0x1cda   :  { %s4404_s6 = smov 128  }
0x1cdb   :  { %3757 = dma.vmem_to_hbm [thread:$0]  %s3752_s15, 256, %s5153_s16, [#allocation3], %s4404_s6, %s4404_s6, %s4400_s24  }
0x1cdc   :  { %4389 = dma.done.wait [#allocation3], 256  }
0x1cdd   :  { %4390 = vsyncadd [#allocation3], 4294967040 }
0x1cde   :  { %3761 = vsyncpa [#allocation3], 1 }

</bundles_post_ra>
